<compile_context>
chip_gen: v6e
topology: v6e:2x2x1
jax: 0.10.0
libtpu: 0.0.40
codegen_flags: <defaults>
</compile_context>

<pallas_src>
import functools

import jax
import jax.numpy as jnp
from jax.experimental import pallas as pl
from jax.experimental.pallas import tpu as pltpu

LANE = 128


def _round_up(x, m):
    return ((x + m - 1) // m) * m


def _num_tensorcores_per_chip():
    """v7x has 2 TensorCores per chip; v5e/v6e have 1."""
    try:
        kind = jax.devices()[0].device_kind.lower()
    except Exception:
        return 1
    return 2 if ("v7" in kind or "tpu7" in kind) else 1


def _pick_row_tile(batch_pad, bytes_per_row, n_cores, vmem_budget):
    """Largest row tile (multiple of 8, <=512) whose double-buffered blocks fit."""
    tb = vmem_budget // max(bytes_per_row, 1)
    tb = max(8, min(512, (tb // 8) * 8))
    if n_cores > 1:
        # keep >= n_cores blocks on the "parallel" grid axis so both v7x cores work
        per_core = _round_up(max(8, (batch_pad + n_cores - 1) // n_cores), 8)
        tb = min(tb, per_core)
    return min(tb, batch_pad)


# -----------------------------------------------------------------------------
# Fused kernel: per batch-row block, both graph views:
#   layer-1 (roots + hop-1 nodes) -> layer-2 -> L2 norm -> concat (lane packed)
#   -> cosine Predictor / T -> per-row cross-entropy.
# All zero-padded weight lanes/rows are exactly zero, so padding is identity math.
# -----------------------------------------------------------------------------
def _semigcl_fused_kernel(
        f0a_ref, f1a_ref, f2a_ref,              # view 1 (adj): roots / hop-1 / hop-2 feats
        f0d_ref, f1d_ref, f2d_ref,              # view 2 (diff)
        lbl_ref,                                # [TB, 1] int32 class ids
        w1s_ref, w1nr_ref, w1nh_ref, b1_ref,    # layer-1 weights (shared by both views)
        w2sa_ref, w2na_ref, b2a_ref,            # layer-2 weights, view-1 lane layout
        w2sd_ref, w2nd_ref, b2d_ref,            # layer-2 weights, view-2 lane layout (offset)
        wca_ref, wcd_ref,                       # classifier halves (rows match view lanes)
        embs_ref, nll_ref,                      # outputs
        *, num_class, inv_temp, n1, n2, pack_views):
    w1s = w1s_ref[...]
    w1nr = w1nr_ref[...]
    w1nh = w1nh_ref[...]
    b1 = b1_ref[...]

    def encode(f0_ref, f1_ref, f2_ref, w2s_ref, w2n_ref, b2_ref):
        f0 = f0_ref[...]                                   # [TB, F]
        f1 = f1_ref[...]                                   # [TB, n1, F]
        tb, fdim = f0.shape
        # ---- layer 1, root nodes: two accumulating MXU dots (mean folded in w1nr)
        nb1 = jnp.sum(f1, axis=1)                          # [TB, F]
        h0 = jnp.dot(f0, w1s, preferred_element_type=jnp.float32)
        h0 = h0 + jnp.dot(nb1, w1nr, preferred_element_type=jnp.float32) + b1
        h0 = jnp.maximum(h0, 0.0)                          # [TB, H1p]
        # ---- layer 1, hop-1 nodes (hop-2 mean folded into w1nh)
        x1 = f1.reshape(tb * n1, fdim)                     # [TB*n1, F]
        nb2 = jnp.sum(f2_ref[...].reshape(tb * n1, n2, fdim), axis=1)
        h1 = jnp.dot(x1, w1s, preferred_element_type=jnp.float32)
        h1 = h1 + jnp.dot(nb2, w1nh, preferred_element_type=jnp.float32) + b1
        h1 = jnp.maximum(h1, 0.0)                          # [TB*n1, H1p]
        # ---- layer 2, root nodes (hop-1 mean folded into w2n)
        nbh = jnp.sum(h1.reshape(tb, n1, h1.shape[-1]), axis=1)
        h2 = jnp.dot(h0, w2s_ref[...], preferred_element_type=jnp.float32)
        h2 = h2 + jnp.dot(nbh, w2n_ref[...], preferred_element_type=jnp.float32) + b2_ref[...]
        h2 = jnp.maximum(h2, 0.0)
        # GraphSAGE final F.normalize(., dim=1) (eps=1e-12) via EUP rsqrt.
        h2 = h2 * jax.lax.rsqrt(
            jnp.maximum(jnp.sum(h2 * h2, axis=1, keepdims=True), 1e-24))
        return h2                                          # [TB, H2p]

    h2a = encode(f0a_ref, f1a_ref, f2a_ref, w2sa_ref, w2na_ref, b2a_ref)
    h2d = encode(f0d_ref, f1d_ref, f2d_ref, w2sd_ref, w2nd_ref, b2d_ref)

    # embs = concat([view1, view2]).  In the packed layout view-2 was computed
    # directly into lanes [H2, 2*H2) (its layer-2 weight columns are offset), so
    # the two views simply add into one 128-lane slab -> single unmasked vst.
    if pack_views:
        embs_ref[...] = h2a + h2d
    else:
        half = h2a.shape[-1]
        embs_ref[:, :half] = h2a
        embs_ref[:, half:] = h2d

    # Predictor: (L2-normalize(embs) @ Wc) / T — views live in disjoint lanes so
    # ||embs||^2 = ||h2a||^2 + ||h2d||^2 and the concat is never materialized.
    inv_norm = jax.lax.rsqrt(jnp.maximum(
        jnp.sum(h2a * h2a, axis=1, keepdims=True)
        + jnp.sum(h2d * h2d, axis=1, keepdims=True), 1e-24))
    logits = (jnp.dot(h2a * inv_norm, wca_ref[...], preferred_element_type=jnp.float32)
              + jnp.dot(h2d * inv_norm, wcd_ref[...], preferred_element_type=jnp.float32)
              ) * inv_temp                                 # [TB, Cp]

    # Per-row cross-entropy; padded class lanes are masked out of the LSE.
    cls = jax.lax.broadcasted_iota(jnp.int32, logits.shape, 1)
    valid = cls < num_class
    masked = jnp.where(valid, logits, jnp.float32(-1e30))
    m = jnp.max(masked, axis=1, keepdims=True)
    p = jnp.where(valid, jnp.exp(masked - m), 0.0)
    lse = m + jnp.log(jnp.sum(p, axis=1, keepdims=True))
    lab = jnp.sum(jnp.where(cls == lbl_ref[...], logits, 0.0), axis=1, keepdims=True)
    nll_ref[...] = lse - lab


# -----------------------------------------------------------------------------
# Host-side glue: gather, weight split/pad, tiling, the single pallas_call.
# -----------------------------------------------------------------------------
def semigcl_forward(adj, adj_val, feature, labels, diff_idx, diff_val, idx,
                    sage_params, w_cls, temp, n1, n2):
    # TODO(synk): the reference UniformNeighborSampler draws n_sample *random*
    # neighbors weighted by adj_val/diff_val; here we deterministically take the
    # first n_sample adjacency slots and ignore the edge values.
    del adj_val, diff_val
    w1, b1, w2, b2 = sage_params
    f32 = jnp.float32
    Fdim = feature.shape[1]
    H1, H2, C = w1.shape[1], w2.shape[1], w_cls.shape[1]
    H1p, H2p, Cp = _round_up(H1, LANE), _round_up(H2, LANE), _round_up(C, LANE)
    B = int(idx.shape[0])
    pack_views = (2 * H2) <= LANE
    Ep = LANE if pack_views else 2 * H2p
    off2 = H2 if pack_views else 0        # lane offset of view-2 inside its slab

    # ---- split + zero-pad parameters; neighbor-mean 1/n folded into weights.
    w1 = w1.astype(f32); w2 = w2.astype(f32); w_cls = w_cls.astype(f32)
    b1 = b1.astype(f32); b2 = b2.astype(f32)
    w1s_p = jnp.zeros((Fdim, H1p), f32).at[:, :H1].set(w1[:Fdim])
    w1nr_p = jnp.zeros((Fdim, H1p), f32).at[:, :H1].set(w1[Fdim:] * (1.0 / n1))
    w1nh_p = jnp.zeros((Fdim, H1p), f32).at[:, :H1].set(w1[Fdim:] * (1.0 / n2))
    b1_p = jnp.zeros((1, H1p), f32).at[0, :H1].set(b1)
    w2sa_p = jnp.zeros((H1p, H2p), f32).at[:H1, :H2].set(w2[:H1])
    w2na_p = jnp.zeros((H1p, H2p), f32).at[:H1, :H2].set(w2[H1:] * (1.0 / n1))
    b2a_p = jnp.zeros((1, H2p), f32).at[0, :H2].set(b2)
    w2sd_p = jnp.zeros((H1p, H2p), f32).at[:H1, off2:off2 + H2].set(w2[:H1])
    w2nd_p = jnp.zeros((H1p, H2p), f32).at[:H1, off2:off2 + H2].set(w2[H1:] * (1.0 / n1))
    b2d_p = jnp.zeros((1, H2p), f32).at[0, off2:off2 + H2].set(b2)
    wca_p = jnp.zeros((H2p, Cp), f32).at[:H2, :C].set(w_cls[:H2])
    wcd_p = jnp.zeros((H2p, Cp), f32).at[off2:off2 + H2, :C].set(w_cls[H2:])

    # ---- neighbor expansion + feature gather (XLA side).  Hop-1 features are
    # gathered once and reused in-kernel as both "neighbors of root" and
    # "self rows of hop-1 nodes" (no duplicated bytes).
    # TODO(synk): for large graphs move this gather into the kernel
    # (feature in memory_space=pl.ANY + per-block DMA of the needed rows).
    def expand(graph):
        ids1 = graph[idx, :n1]                               # [B, n1]
        ids2 = graph[ids1.reshape(-1), :n2]                  # [B*n1, n2]
        f0 = feature[idx].astype(f32)                        # [B, F]
        f1 = feature[ids1].astype(f32)                       # [B, n1, F]
        f2 = feature[ids2].astype(f32).reshape(B, n1, n2, Fdim)
        return f0, f1, f2

    f0a, f1a, f2a = expand(adj)
    f0d, f1d, f2d = expand(diff_idx)
    labels_idx = jnp.argmax(labels[idx], axis=1).astype(jnp.int32).reshape(B, 1)

    # ---- generation-aware row tiling (v7x: 2 cores / 64 MiB; v5e/v6e: 1 / 128 MiB)
    n_cores = _num_tensorcores_per_chip()
    vmem_limit = (32 << 20) if n_cores > 1 else (64 << 20)
    budget = vmem_limit // 2
    Fp_vmem = _round_up(Fdim, LANE)
    bytes_per_row = 4 * (
        2 * 2 * (Fp_vmem + _round_up(n1, 8) * Fp_vmem + n1 * _round_up(n2, 8) * Fp_vmem)
        + 2 * n1 * H1p + 2 * (Ep + LANE))
    B8 = _round_up(B, 8)
    tb = _pick_row_tile(B8, bytes_per_row, n_cores, budget)
    Bp = _round_up(B, tb)

    def pad_rows(x):
        if Bp == x.shape[0]:
            return x
        return jnp.pad(x, ((0, Bp - x.shape[0]),) + ((0, 0),) * (x.ndim - 1))

    f0a, f1a, f2a = map(pad_rows, (f0a, f1a, f2a))
    f0d, f1d, f2d = map(pad_rows, (f0d, f1d, f2d))
    labels_idx = pad_rows(labels_idx)

    kernel = functools.partial(
        _semigcl_fused_kernel, num_class=C, inv_temp=float(1.0 / temp),
        n1=n1, n2=n2, pack_views=pack_views)

    weight_bytes = 4 * (3 * Fdim * H1p + H1p + 4 * H1p * H2p + 2 * H2p + 2 * H2p * Cp)
    bytes_accessed = (4 * 2 * (f0a.size + f1a.size + f2a.size)
                      + 4 * labels_idx.size + weight_bytes
                      + 4 * (Bp * Ep + Bp))
    flops = 2 * B * (4 * Fdim * H1p * (1 + n1) + 4 * H1p * H2p + 2 * H2p * Cp)
    cost = pl.CostEstimate(flops=int(flops),
                           transcendentals=int(B * (3 + Cp)),
                           bytes_accessed=int(bytes_accessed))

    embs_pad, nll = pl.pallas_call(
        kernel,
        out_shape=(jax.ShapeDtypeStruct((Bp, Ep), f32),
                   jax.ShapeDtypeStruct((Bp, 1), f32)),
        grid=(Bp // tb,),
        in_specs=[
            pl.BlockSpec((tb, Fdim), lambda i: (i, 0)),                 # f0  view 1
            pl.BlockSpec((tb, n1, Fdim), lambda i: (i, 0, 0)),          # f1  view 1
            pl.BlockSpec((tb, n1, n2, Fdim), lambda i: (i, 0, 0, 0)),   # f2  view 1
            pl.BlockSpec((tb, Fdim), lambda i: (i, 0)),                 # f0  view 2
            pl.BlockSpec((tb, n1, Fdim), lambda i: (i, 0, 0)),          # f1  view 2
            pl.BlockSpec((tb, n1, n2, Fdim), lambda i: (i, 0, 0, 0)),   # f2  view 2
            pl.BlockSpec((tb, 1), lambda i: (i, 0)),                    # labels
            pl.BlockSpec((Fdim, H1p), lambda i: (0, 0)),                # w1 self
            pl.BlockSpec((Fdim, H1p), lambda i: (0, 0)),                # w1 nb (1/n1)
            pl.BlockSpec((Fdim, H1p), lambda i: (0, 0)),                # w1 nb (1/n2)
            pl.BlockSpec((1, H1p), lambda i: (0, 0)),                   # b1
            pl.BlockSpec((H1p, H2p), lambda i: (0, 0)),                 # w2 self (view 1)
            pl.BlockSpec((H1p, H2p), lambda i: (0, 0)),                 # w2 nb   (view 1)
            pl.BlockSpec((1, H2p), lambda i: (0, 0)),                   # b2      (view 1)
            pl.BlockSpec((H1p, H2p), lambda i: (0, 0)),                 # w2 self (view 2)
            pl.BlockSpec((H1p, H2p), lambda i: (0, 0)),                 # w2 nb   (view 2)
            pl.BlockSpec((1, H2p), lambda i: (0, 0)),                   # b2      (view 2)
            pl.BlockSpec((H2p, Cp), lambda i: (0, 0)),                  # wcls view-1 half
            pl.BlockSpec((H2p, Cp), lambda i: (0, 0)),                  # wcls view-2 half
        ],
        out_specs=(pl.BlockSpec((tb, Ep), lambda i: (i, 0)),
                   pl.BlockSpec((tb, 1), lambda i: (i, 0))),
        compiler_params=pltpu.CompilerParams(
            dimension_semantics=("parallel",),
            vmem_limit_bytes=vmem_limit),
        cost_estimate=cost,
    )(f0a, f1a, f2a, f0d, f1d, f2d, labels_idx,
      w1s_p, w1nr_p, w1nh_p, b1_p,
      w2sa_p, w2na_p, b2a_p, w2sd_p, w2nd_p, b2d_p,
      wca_p, wcd_p)

    loss = jnp.sum(nll[:B, 0]) / B
    if pack_views:
        embs = embs_pad[:B, :2 * H2]
    else:
        embs = jnp.concatenate([embs_pad[:B, :H2], embs_pad[:B, H2p:H2p + H2]], axis=1)
    return embs, loss


# -----------------------------------------------------------------------------
# Pure-JAX reference (same deterministic first-n "sampling") for a sanity check.
# -----------------------------------------------------------------------------
def _reference(adj, feature, labels, diff_idx, idx, params, w_cls, temp, n1, n2):
    w1, b1, w2, b2 = params
    Fdim = feature.shape[1]

    def sage(graph):
        ids1 = graph[idx, :n1]
        ids2 = graph[ids1.reshape(-1), :n2]
        f0, f1, f2 = feature[idx], feature[ids1], feature[ids2]
        h0 = jax.nn.relu(jnp.concatenate([f0, f1.mean(1)], -1) @ w1 + b1)
        h1 = jax.nn.relu(jnp.concatenate([f1.reshape(-1, Fdim), f2.mean(1)], -1) @ w1 + b1)
        h1 = h1.reshape(idx.shape[0], n1, -1)
        h2 = jax.nn.relu(jnp.concatenate([h0, h1.mean(1)], -1) @ w2 + b2)
        return h2 / jnp.maximum(jnp.linalg.norm(h2, axis=1, keepdims=True), 1e-12)

    embs = jnp.concatenate([sage(adj), sage(diff_idx)], axis=1)
    xn = embs / jnp.maximum(jnp.linalg.norm(embs, axis=1, keepdims=True), 1e-12)
    logits = (xn @ w_cls) / temp
    lbl = jnp.argmax(labels[idx], axis=1)
    loss = jnp.mean(jax.nn.logsumexp(logits, axis=1)
                    - jnp.take_along_axis(logits, lbl[:, None], 1)[:, 0])
    return embs, loss


# -----------------------------------------------------------------------------
if __name__ == "__main__":
    key = jax.random.PRNGKey(0)
    keys = jax.random.split(key, 10)

    # Small synthetic problem (num_features=32, num_class=4,
    # args.n_samples="4,4", args.output_dims="32,16", args.T=0.05).
    N, Fdim, max_deg, C = 64, 32, 8, 4
    n1, n2 = 4, 4
    H1, H2 = 32, 16
    B = 8
    T = 0.05

    feature = jax.random.normal(keys[0], (N, Fdim), jnp.float32)
    adj = jax.random.randint(keys[1], (N, max_deg), 0, N, jnp.int32)
    adj_val = jax.random.uniform(keys[2], (N, max_deg), jnp.float32)
    diff_idx = jax.random.randint(keys[3], (N, max_deg), 0, N, jnp.int32)
    diff_val = jax.random.uniform(keys[4], (N, max_deg), jnp.float32)
    label_ids = jax.random.randint(keys[5], (N,), 0, C, jnp.int32)
    labels = jax.nn.one_hot(label_ids, C, dtype=jnp.float32)
    idx = jnp.arange(B, dtype=jnp.int32)

    def init_w(k, shape):
        return jax.random.normal(k, shape, jnp.float32) / jnp.sqrt(shape[0])

    w1 = init_w(keys[6], (2 * Fdim, H1)); b1 = jnp.zeros((H1,), jnp.float32)
    w2 = init_w(keys[7], (2 * H1, H2));   b2 = jnp.zeros((H2,), jnp.float32)
    w_cls = init_w(keys[8], (2 * H2, C))  # Predictor: bias-free linear / temperature

    embs, cly_loss = semigcl_forward(
        adj, adj_val, feature, labels, diff_idx, diff_val, idx,
        (w1, b1, w2, b2), w_cls, T, n1, n2)
    jax.block_until_ready((embs, cly_loss))

    assert embs.shape == (B, 2 * H2)
    assert cly_loss.shape == ()
    assert bool(jnp.isfinite(cly_loss))

    # Numerical sanity vs a pure-JAX reference (loose tolerance covers MXU
    # f32-matmul pass differences between Mosaic and XLA).
    ref_embs, ref_loss = _reference(adj, feature, labels, diff_idx, idx,
                                    (w1, b1, w2, b2), w_cls, T, n1, n2)
    max_err = float(jnp.max(jnp.abs(embs - ref_embs)))
    assert max_err < 2e-2, f"embs mismatch: {max_err}"
    assert abs(float(cly_loss) - float(ref_loss)) < 1e-1, \
        f"loss mismatch: {float(cly_loss)} vs {float(ref_loss)}"

    print("KERNEL_OK")
</pallas_src>

<mosaic_0001>
module attributes {stable_mosaic.version = 11 : i64} {
  func.func @_semigcl_fused_kernel(%arg0: i32, %arg1: memref<8x32xf32, #tpu.memory_space<vmem>>, %arg2: memref<8x4x32xf32, #tpu.memory_space<vmem>>, %arg3: memref<8x4x4x32xf32, #tpu.memory_space<vmem>>, %arg4: memref<8x32xf32, #tpu.memory_space<vmem>>, %arg5: memref<8x4x32xf32, #tpu.memory_space<vmem>>, %arg6: memref<8x4x4x32xf32, #tpu.memory_space<vmem>>, %arg7: memref<8x1xi32, #tpu.memory_space<vmem>>, %arg8: memref<32x128xf32, #tpu.memory_space<vmem>>, %arg9: memref<32x128xf32, #tpu.memory_space<vmem>>, %arg10: memref<32x128xf32, #tpu.memory_space<vmem>>, %arg11: memref<1x128xf32, #tpu.memory_space<vmem>>, %arg12: memref<128x128xf32, #tpu.memory_space<vmem>>, %arg13: memref<128x128xf32, #tpu.memory_space<vmem>>, %arg14: memref<1x128xf32, #tpu.memory_space<vmem>>, %arg15: memref<128x128xf32, #tpu.memory_space<vmem>>, %arg16: memref<128x128xf32, #tpu.memory_space<vmem>>, %arg17: memref<1x128xf32, #tpu.memory_space<vmem>>, %arg18: memref<128x128xf32, #tpu.memory_space<vmem>>, %arg19: memref<128x128xf32, #tpu.memory_space<vmem>>, %arg20: memref<8x128xf32, #tpu.memory_space<vmem>>, %arg21: memref<8x1xf32, #tpu.memory_space<vmem>>) attributes {dimension_semantics = [#tpu.dimension_semantics<parallel>], iteration_bounds = array<i64: 1>, scalar_prefetch = 0 : i64, scratch_operands = 0 : i64, tpu.core_type = #tpu.core_type<tc>, window_params = [{transform_indices = @transform_0, window_bounds = array<i64: 8, 32>}, {transform_indices = @transform_1, window_bounds = array<i64: 8, 4, 32>}, {transform_indices = @transform_2, window_bounds = array<i64: 8, 4, 4, 32>}, {transform_indices = @transform_3, window_bounds = array<i64: 8, 32>}, {transform_indices = @transform_4, window_bounds = array<i64: 8, 4, 32>}, {transform_indices = @transform_5, window_bounds = array<i64: 8, 4, 4, 32>}, {transform_indices = @transform_6, window_bounds = array<i64: 8, 1>}, {pipeline_mode = #tpu.pipeline_mode<synchronous>, transform_indices = @transform_7, window_bounds = array<i64: 32, 128>}, {pipeline_mode = #tpu.pipeline_mode<synchronous>, transform_indices = @transform_8, window_bounds = array<i64: 32, 128>}, {pipeline_mode = #tpu.pipeline_mode<synchronous>, transform_indices = @transform_9, window_bounds = array<i64: 32, 128>}, {pipeline_mode = #tpu.pipeline_mode<synchronous>, transform_indices = @transform_10, window_bounds = array<i64: 1, 128>}, {pipeline_mode = #tpu.pipeline_mode<synchronous>, transform_indices = @transform_11, window_bounds = array<i64: 128, 128>}, {pipeline_mode = #tpu.pipeline_mode<synchronous>, transform_indices = @transform_12, window_bounds = array<i64: 128, 128>}, {pipeline_mode = #tpu.pipeline_mode<synchronous>, transform_indices = @transform_13, window_bounds = array<i64: 1, 128>}, {pipeline_mode = #tpu.pipeline_mode<synchronous>, transform_indices = @transform_14, window_bounds = array<i64: 128, 128>}, {pipeline_mode = #tpu.pipeline_mode<synchronous>, transform_indices = @transform_15, window_bounds = array<i64: 128, 128>}, {pipeline_mode = #tpu.pipeline_mode<synchronous>, transform_indices = @transform_16, window_bounds = array<i64: 1, 128>}, {pipeline_mode = #tpu.pipeline_mode<synchronous>, transform_indices = @transform_17, window_bounds = array<i64: 128, 128>}, {pipeline_mode = #tpu.pipeline_mode<synchronous>, transform_indices = @transform_18, window_bounds = array<i64: 128, 128>}, {transform_indices = @transform_19, window_bounds = array<i64: 8, 128>}, {transform_indices = @transform_20, window_bounds = array<i64: 8, 1>}]} {
    %c0 = arith.constant 0 : index
    %c0_0 = arith.constant 0 : index
    %0 = vector.load %arg8[%c0, %c0_0] : memref<32x128xf32, #tpu.memory_space<vmem>>, vector<32x128xf32>
    %c0_1 = arith.constant 0 : index
    %c0_2 = arith.constant 0 : index
    %1 = vector.load %arg9[%c0_1, %c0_2] : memref<32x128xf32, #tpu.memory_space<vmem>>, vector<32x128xf32>
    %c0_3 = arith.constant 0 : index
    %c0_4 = arith.constant 0 : index
    %2 = vector.load %arg10[%c0_3, %c0_4] : memref<32x128xf32, #tpu.memory_space<vmem>>, vector<32x128xf32>
    %c0_5 = arith.constant 0 : index
    %c0_6 = arith.constant 0 : index
    %3 = vector.load %arg11[%c0_5, %c0_6] : memref<1x128xf32, #tpu.memory_space<vmem>>, vector<1x128xf32>
    %c0_7 = arith.constant 0 : index
    %c0_8 = arith.constant 0 : index
    %4 = vector.load %arg1[%c0_7, %c0_8] : memref<8x32xf32, #tpu.memory_space<vmem>>, vector<8x32xf32>
    %c0_9 = arith.constant 0 : index
    %c0_10 = arith.constant 0 : index
    %c0_11 = arith.constant 0 : index
    %5 = vector.load %arg2[%c0_9, %c0_10, %c0_11] : memref<8x4x32xf32, #tpu.memory_space<vmem>>, vector<8x4x32xf32>
    %cst = arith.constant dense<0.000000e+00> : vector<8x32xf32>
    %6 = vector.multi_reduction <add>, %5, %cst [1] : vector<8x4x32xf32> to vector<8x32xf32>
    %cst_12 = arith.constant dense<0.000000e+00> : vector<8x128xf32>
    %7 = tpu.matmul %4, %0, %cst_12 {dimension_numbers = #tpu.dot_dimension_numbers<[1], [0], [0], [1], [0, 0, 1, 1], [], []>} : vector<8x32xf32>, vector<32x128xf32>, vector<8x128xf32> -> vector<8x128xf32>
    %cst_13 = arith.constant dense<0.000000e+00> : vector<8x128xf32>
    %8 = tpu.matmul %6, %1, %cst_13 {dimension_numbers = #tpu.dot_dimension_numbers<[1], [0], [0], [1], [0, 0, 1, 1], [], []>} : vector<8x32xf32>, vector<32x128xf32>, vector<8x128xf32> -> vector<8x128xf32>
    %9 = arith.addf %7, %8 : vector<8x128xf32>
    %10 = vector.broadcast %3 : vector<1x128xf32> to vector<8x128xf32>
    %11 = arith.addf %9, %10 : vector<8x128xf32>
    %cst_14 = arith.constant 0.000000e+00 : f32
    %12 = vector.broadcast %cst_14 : f32 to vector<8x128xf32>
    %13 = arith.maximumf %11, %12 : vector<8x128xf32>
    %14 = vector.shape_cast %5 : vector<8x4x32xf32> to vector<32x32xf32>
    %c0_15 = arith.constant 0 : index
    %c0_16 = arith.constant 0 : index
    %c0_17 = arith.constant 0 : index
    %c0_18 = arith.constant 0 : index
    %15 = vector.load %arg3[%c0_15, %c0_16, %c0_17, %c0_18] : memref<8x4x4x32xf32, #tpu.memory_space<vmem>>, vector<8x4x4x32xf32>
    %16 = vector.shape_cast %15 : vector<8x4x4x32xf32> to vector<32x4x32xf32>
    %cst_19 = arith.constant dense<0.000000e+00> : vector<32x32xf32>
    %17 = vector.multi_reduction <add>, %16, %cst_19 [1] : vector<32x4x32xf32> to vector<32x32xf32>
    %cst_20 = arith.constant dense<0.000000e+00> : vector<32x128xf32>
    %18 = tpu.matmul %14, %0, %cst_20 {dimension_numbers = #tpu.dot_dimension_numbers<[1], [0], [0], [1], [0, 0, 1, 1], [], []>} : vector<32x32xf32>, vector<32x128xf32>, vector<32x128xf32> -> vector<32x128xf32>
    %cst_21 = arith.constant dense<0.000000e+00> : vector<32x128xf32>
    %19 = tpu.matmul %17, %2, %cst_21 {dimension_numbers = #tpu.dot_dimension_numbers<[1], [0], [0], [1], [0, 0, 1, 1], [], []>} : vector<32x32xf32>, vector<32x128xf32>, vector<32x128xf32> -> vector<32x128xf32>
    %20 = arith.addf %18, %19 : vector<32x128xf32>
    %21 = vector.broadcast %3 : vector<1x128xf32> to vector<32x128xf32>
    %22 = arith.addf %20, %21 : vector<32x128xf32>
    %cst_22 = arith.constant 0.000000e+00 : f32
    %23 = vector.broadcast %cst_22 : f32 to vector<32x128xf32>
    %24 = arith.maximumf %22, %23 : vector<32x128xf32>
    %25 = vector.shape_cast %24 : vector<32x128xf32> to vector<8x4x128xf32>
    %cst_23 = arith.constant dense<0.000000e+00> : vector<8x128xf32>
    %26 = vector.multi_reduction <add>, %25, %cst_23 [1] : vector<8x4x128xf32> to vector<8x128xf32>
    %c0_24 = arith.constant 0 : index
    %c0_25 = arith.constant 0 : index
    %27 = vector.load %arg12[%c0_24, %c0_25] : memref<128x128xf32, #tpu.memory_space<vmem>>, vector<128x128xf32>
    %cst_26 = arith.constant dense<0.000000e+00> : vector<8x128xf32>
    %28 = tpu.matmul %13, %27, %cst_26 {dimension_numbers = #tpu.dot_dimension_numbers<[1], [0], [0], [1], [0, 0, 1, 1], [], []>} : vector<8x128xf32>, vector<128x128xf32>, vector<8x128xf32> -> vector<8x128xf32>
    %c0_27 = arith.constant 0 : index
    %c0_28 = arith.constant 0 : index
    %29 = vector.load %arg13[%c0_27, %c0_28] : memref<128x128xf32, #tpu.memory_space<vmem>>, vector<128x128xf32>
    %cst_29 = arith.constant dense<0.000000e+00> : vector<8x128xf32>
    %30 = tpu.matmul %26, %29, %cst_29 {dimension_numbers = #tpu.dot_dimension_numbers<[1], [0], [0], [1], [0, 0, 1, 1], [], []>} : vector<8x128xf32>, vector<128x128xf32>, vector<8x128xf32> -> vector<8x128xf32>
    %31 = arith.addf %28, %30 : vector<8x128xf32>
    %c0_30 = arith.constant 0 : index
    %c0_31 = arith.constant 0 : index
    %32 = vector.load %arg14[%c0_30, %c0_31] : memref<1x128xf32, #tpu.memory_space<vmem>>, vector<1x128xf32>
    %33 = vector.broadcast %32 : vector<1x128xf32> to vector<8x128xf32>
    %34 = arith.addf %31, %33 : vector<8x128xf32>
    %cst_32 = arith.constant 0.000000e+00 : f32
    %35 = vector.broadcast %cst_32 : f32 to vector<8x128xf32>
    %36 = arith.maximumf %34, %35 : vector<8x128xf32>
    %37 = arith.mulf %36, %36 : vector<8x128xf32>
    %cst_33 = arith.constant dense<0.000000e+00> : vector<8xf32>
    %38 = vector.multi_reduction <add>, %37, %cst_33 [1] : vector<8x128xf32> to vector<8xf32>
    %39 = vector.shape_cast %38 : vector<8xf32> to vector<8x1xf32>
    %cst_34 = arith.constant 1.000000e-24 : f32
    %40 = vector.broadcast %cst_34 : f32 to vector<8x1xf32>
    %41 = arith.maximumf %39, %40 : vector<8x1xf32>
    %42 = math.rsqrt %41 : vector<8x1xf32>
    %43 = vector.broadcast %42 : vector<8x1xf32> to vector<8x128xf32>
    %44 = arith.mulf %36, %43 : vector<8x128xf32>
    %c0_35 = arith.constant 0 : index
    %c0_36 = arith.constant 0 : index
    %45 = vector.load %arg4[%c0_35, %c0_36] : memref<8x32xf32, #tpu.memory_space<vmem>>, vector<8x32xf32>
    %c0_37 = arith.constant 0 : index
    %c0_38 = arith.constant 0 : index
    %c0_39 = arith.constant 0 : index
    %46 = vector.load %arg5[%c0_37, %c0_38, %c0_39] : memref<8x4x32xf32, #tpu.memory_space<vmem>>, vector<8x4x32xf32>
    %cst_40 = arith.constant dense<0.000000e+00> : vector<8x32xf32>
    %47 = vector.multi_reduction <add>, %46, %cst_40 [1] : vector<8x4x32xf32> to vector<8x32xf32>
    %cst_41 = arith.constant dense<0.000000e+00> : vector<8x128xf32>
    %48 = tpu.matmul %45, %0, %cst_41 {dimension_numbers = #tpu.dot_dimension_numbers<[1], [0], [0], [1], [0, 0, 1, 1], [], []>} : vector<8x32xf32>, vector<32x128xf32>, vector<8x128xf32> -> vector<8x128xf32>
    %cst_42 = arith.constant dense<0.000000e+00> : vector<8x128xf32>
    %49 = tpu.matmul %47, %1, %cst_42 {dimension_numbers = #tpu.dot_dimension_numbers<[1], [0], [0], [1], [0, 0, 1, 1], [], []>} : vector<8x32xf32>, vector<32x128xf32>, vector<8x128xf32> -> vector<8x128xf32>
    %50 = arith.addf %48, %49 : vector<8x128xf32>
    %51 = vector.broadcast %3 : vector<1x128xf32> to vector<8x128xf32>
    %52 = arith.addf %50, %51 : vector<8x128xf32>
    %cst_43 = arith.constant 0.000000e+00 : f32
    %53 = vector.broadcast %cst_43 : f32 to vector<8x128xf32>
    %54 = arith.maximumf %52, %53 : vector<8x128xf32>
    %55 = vector.shape_cast %46 : vector<8x4x32xf32> to vector<32x32xf32>
    %c0_44 = arith.constant 0 : index
    %c0_45 = arith.constant 0 : index
    %c0_46 = arith.constant 0 : index
    %c0_47 = arith.constant 0 : index
    %56 = vector.load %arg6[%c0_44, %c0_45, %c0_46, %c0_47] : memref<8x4x4x32xf32, #tpu.memory_space<vmem>>, vector<8x4x4x32xf32>
    %57 = vector.shape_cast %56 : vector<8x4x4x32xf32> to vector<32x4x32xf32>
    %cst_48 = arith.constant dense<0.000000e+00> : vector<32x32xf32>
    %58 = vector.multi_reduction <add>, %57, %cst_48 [1] : vector<32x4x32xf32> to vector<32x32xf32>
    %cst_49 = arith.constant dense<0.000000e+00> : vector<32x128xf32>
    %59 = tpu.matmul %55, %0, %cst_49 {dimension_numbers = #tpu.dot_dimension_numbers<[1], [0], [0], [1], [0, 0, 1, 1], [], []>} : vector<32x32xf32>, vector<32x128xf32>, vector<32x128xf32> -> vector<32x128xf32>
    %cst_50 = arith.constant dense<0.000000e+00> : vector<32x128xf32>
    %60 = tpu.matmul %58, %2, %cst_50 {dimension_numbers = #tpu.dot_dimension_numbers<[1], [0], [0], [1], [0, 0, 1, 1], [], []>} : vector<32x32xf32>, vector<32x128xf32>, vector<32x128xf32> -> vector<32x128xf32>
    %61 = arith.addf %59, %60 : vector<32x128xf32>
    %62 = vector.broadcast %3 : vector<1x128xf32> to vector<32x128xf32>
    %63 = arith.addf %61, %62 : vector<32x128xf32>
    %cst_51 = arith.constant 0.000000e+00 : f32
    %64 = vector.broadcast %cst_51 : f32 to vector<32x128xf32>
    %65 = arith.maximumf %63, %64 : vector<32x128xf32>
    %66 = vector.shape_cast %65 : vector<32x128xf32> to vector<8x4x128xf32>
    %cst_52 = arith.constant dense<0.000000e+00> : vector<8x128xf32>
    %67 = vector.multi_reduction <add>, %66, %cst_52 [1] : vector<8x4x128xf32> to vector<8x128xf32>
    %c0_53 = arith.constant 0 : index
    %c0_54 = arith.constant 0 : index
    %68 = vector.load %arg15[%c0_53, %c0_54] : memref<128x128xf32, #tpu.memory_space<vmem>>, vector<128x128xf32>
    %cst_55 = arith.constant dense<0.000000e+00> : vector<8x128xf32>
    %69 = tpu.matmul %54, %68, %cst_55 {dimension_numbers = #tpu.dot_dimension_numbers<[1], [0], [0], [1], [0, 0, 1, 1], [], []>} : vector<8x128xf32>, vector<128x128xf32>, vector<8x128xf32> -> vector<8x128xf32>
    %c0_56 = arith.constant 0 : index
    %c0_57 = arith.constant 0 : index
    %70 = vector.load %arg16[%c0_56, %c0_57] : memref<128x128xf32, #tpu.memory_space<vmem>>, vector<128x128xf32>
    %cst_58 = arith.constant dense<0.000000e+00> : vector<8x128xf32>
    %71 = tpu.matmul %67, %70, %cst_58 {dimension_numbers = #tpu.dot_dimension_numbers<[1], [0], [0], [1], [0, 0, 1, 1], [], []>} : vector<8x128xf32>, vector<128x128xf32>, vector<8x128xf32> -> vector<8x128xf32>
    %72 = arith.addf %69, %71 : vector<8x128xf32>
    %c0_59 = arith.constant 0 : index
    %c0_60 = arith.constant 0 : index
    %73 = vector.load %arg17[%c0_59, %c0_60] : memref<1x128xf32, #tpu.memory_space<vmem>>, vector<1x128xf32>
    %74 = vector.broadcast %73 : vector<1x128xf32> to vector<8x128xf32>
    %75 = arith.addf %72, %74 : vector<8x128xf32>
    %cst_61 = arith.constant 0.000000e+00 : f32
    %76 = vector.broadcast %cst_61 : f32 to vector<8x128xf32>
    %77 = arith.maximumf %75, %76 : vector<8x128xf32>
    %78 = arith.mulf %77, %77 : vector<8x128xf32>
    %cst_62 = arith.constant dense<0.000000e+00> : vector<8xf32>
    %79 = vector.multi_reduction <add>, %78, %cst_62 [1] : vector<8x128xf32> to vector<8xf32>
    %80 = vector.shape_cast %79 : vector<8xf32> to vector<8x1xf32>
    %cst_63 = arith.constant 1.000000e-24 : f32
    %81 = vector.broadcast %cst_63 : f32 to vector<8x1xf32>
    %82 = arith.maximumf %80, %81 : vector<8x1xf32>
    %83 = math.rsqrt %82 : vector<8x1xf32>
    %84 = vector.broadcast %83 : vector<8x1xf32> to vector<8x128xf32>
    %85 = arith.mulf %77, %84 : vector<8x128xf32>
    %86 = arith.addf %44, %85 : vector<8x128xf32>
    %c0_64 = arith.constant 0 : index
    %c0_65 = arith.constant 0 : index
    %87 = vector.load %arg20[%c0_64, %c0_65] : memref<8x128xf32, #tpu.memory_space<vmem>>, vector<8x128xf32>
    tpu.vector_store %arg20[%c0_64, %c0_65], %86 {strides = array<i32>} : memref<8x128xf32, #tpu.memory_space<vmem>>, vector<8x128xf32>,
    %88 = arith.mulf %44, %44 : vector<8x128xf32>
    %cst_66 = arith.constant dense<0.000000e+00> : vector<8xf32>
    %89 = vector.multi_reduction <add>, %88, %cst_66 [1] : vector<8x128xf32> to vector<8xf32>
    %90 = vector.shape_cast %89 : vector<8xf32> to vector<8x1xf32>
    %91 = arith.mulf %85, %85 : vector<8x128xf32>
    %cst_67 = arith.constant dense<0.000000e+00> : vector<8xf32>
    %92 = vector.multi_reduction <add>, %91, %cst_67 [1] : vector<8x128xf32> to vector<8xf32>
    %93 = vector.shape_cast %92 : vector<8xf32> to vector<8x1xf32>
    %94 = arith.addf %90, %93 : vector<8x1xf32>
    %cst_68 = arith.constant 1.000000e-24 : f32
    %95 = vector.broadcast %cst_68 : f32 to vector<8x1xf32>
    %96 = arith.maximumf %94, %95 : vector<8x1xf32>
    %97 = math.rsqrt %96 : vector<8x1xf32>
    %98 = vector.broadcast %97 : vector<8x1xf32> to vector<8x128xf32>
    %99 = arith.mulf %44, %98 : vector<8x128xf32>
    %c0_69 = arith.constant 0 : index
    %c0_70 = arith.constant 0 : index
    %100 = vector.load %arg18[%c0_69, %c0_70] : memref<128x128xf32, #tpu.memory_space<vmem>>, vector<128x128xf32>
    %cst_71 = arith.constant dense<0.000000e+00> : vector<8x128xf32>
    %101 = tpu.matmul %99, %100, %cst_71 {dimension_numbers = #tpu.dot_dimension_numbers<[1], [0], [0], [1], [0, 0, 1, 1], [], []>} : vector<8x128xf32>, vector<128x128xf32>, vector<8x128xf32> -> vector<8x128xf32>
    %102 = vector.broadcast %97 : vector<8x1xf32> to vector<8x128xf32>
    %103 = arith.mulf %85, %102 : vector<8x128xf32>
    %c0_72 = arith.constant 0 : index
    %c0_73 = arith.constant 0 : index
    %104 = vector.load %arg19[%c0_72, %c0_73] : memref<128x128xf32, #tpu.memory_space<vmem>>, vector<128x128xf32>
    %cst_74 = arith.constant dense<0.000000e+00> : vector<8x128xf32>
    %105 = tpu.matmul %103, %104, %cst_74 {dimension_numbers = #tpu.dot_dimension_numbers<[1], [0], [0], [1], [0, 0, 1, 1], [], []>} : vector<8x128xf32>, vector<128x128xf32>, vector<8x128xf32> -> vector<8x128xf32>
    %106 = arith.addf %101, %105 : vector<8x128xf32>
    %cst_75 = arith.constant 2.000000e+01 : f32
    %107 = vector.broadcast %cst_75 : f32 to vector<8x128xf32>
    %108 = arith.mulf %106, %107 : vector<8x128xf32>
    %109 = tpu.iota {dimensions = array<i32: 1>} : vector<8x128xi32>
    %c4_i32 = arith.constant 4 : i32
    %110 = vector.broadcast %c4_i32 : i32 to vector<8x128xi32>
    %111 = arith.cmpi slt, %109, %110 : vector<8x128xi32>
    %cst_76 = arith.constant -1.000000e+30 : f32
    %112 = vector.broadcast %cst_76 : f32 to vector<8x128xf32>
    %113 = arith.select %111, %108, %112 : vector<8x128xi1>, vector<8x128xf32>
    %cst_77 = arith.constant dense<0xFF800000> : vector<8xf32>
    %114 = vector.multi_reduction <maximumf>, %113, %cst_77 [1] : vector<8x128xf32> to vector<8xf32>
    %115 = vector.shape_cast %114 : vector<8xf32> to vector<8x1xf32>
    %116 = vector.broadcast %115 : vector<8x1xf32> to vector<8x128xf32>
    %117 = arith.subf %113, %116 : vector<8x128xf32>
    %118 = math.exp %117 : vector<8x128xf32>
    %cst_78 = arith.constant 0.000000e+00 : f32
    %119 = vector.broadcast %cst_78 : f32 to vector<8x128xf32>
    %120 = arith.select %111, %118, %119 : vector<8x128xi1>, vector<8x128xf32>
    %cst_79 = arith.constant dense<0.000000e+00> : vector<8xf32>
    %121 = vector.multi_reduction <add>, %120, %cst_79 [1] : vector<8x128xf32> to vector<8xf32>
    %122 = vector.shape_cast %121 : vector<8xf32> to vector<8x1xf32>
    %123 = math.log %122 : vector<8x1xf32>
    %124 = arith.addf %115, %123 : vector<8x1xf32>
    %c0_80 = arith.constant 0 : index
    %c0_81 = arith.constant 0 : index
    %125 = vector.load %arg7[%c0_80, %c0_81] : memref<8x1xi32, #tpu.memory_space<vmem>>, vector<8x1xi32>
    %126 = vector.broadcast %125 : vector<8x1xi32> to vector<8x128xi32>
    %127 = arith.cmpi eq, %109, %126 : vector<8x128xi32>
    %cst_82 = arith.constant 0.000000e+00 : f32
    %128 = vector.broadcast %cst_82 : f32 to vector<8x128xf32>
    %129 = arith.select %127, %108, %128 : vector<8x128xi1>, vector<8x128xf32>
    %cst_83 = arith.constant dense<0.000000e+00> : vector<8xf32>
    %130 = vector.multi_reduction <add>, %129, %cst_83 [1] : vector<8x128xf32> to vector<8xf32>
    %131 = vector.shape_cast %130 : vector<8xf32> to vector<8x1xf32>
    %132 = arith.subf %124, %131 : vector<8x1xf32>
    %c0_84 = arith.constant 0 : index
    %c0_85 = arith.constant 0 : index
    %133 = vector.load %arg21[%c0_84, %c0_85] : memref<8x1xf32, #tpu.memory_space<vmem>>, vector<8x1xf32>
    tpu.vector_store %arg21[%c0_84, %c0_85], %132 {strides = array<i32>} : memref<8x1xf32, #tpu.memory_space<vmem>>, vector<8x1xf32>,
    return
  }
  func.func @transform_0(%arg0: i32) -> (i32, i32) {
    %c0_i32 = arith.constant 0 : i32
    %c0_i32_0 = arith.constant 0 : i32
    return %arg0, %c0_i32 : i32, i32
  }
  func.func @transform_1(%arg0: i32) -> (i32, i32, i32) {
    %c0_i32 = arith.constant 0 : i32
    %c0_i32_0 = arith.constant 0 : i32
    %c0_i32_1 = arith.constant 0 : i32
    return %arg0, %c0_i32, %c0_i32_0 : i32, i32, i32
  }
  func.func @transform_2(%arg0: i32) -> (i32, i32, i32, i32) {
    %c0_i32 = arith.constant 0 : i32
    %c0_i32_0 = arith.constant 0 : i32
    %c0_i32_1 = arith.constant 0 : i32
    %c0_i32_2 = arith.constant 0 : i32
    return %arg0, %c0_i32, %c0_i32_0, %c0_i32_1 : i32, i32, i32, i32
  }
  func.func @transform_3(%arg0: i32) -> (i32, i32) {
    %c0_i32 = arith.constant 0 : i32
    %c0_i32_0 = arith.constant 0 : i32
    return %arg0, %c0_i32 : i32, i32
  }
  func.func @transform_4(%arg0: i32) -> (i32, i32, i32) {
    %c0_i32 = arith.constant 0 : i32
    %c0_i32_0 = arith.constant 0 : i32
    %c0_i32_1 = arith.constant 0 : i32
    return %arg0, %c0_i32, %c0_i32_0 : i32, i32, i32
  }
  func.func @transform_5(%arg0: i32) -> (i32, i32, i32, i32) {
    %c0_i32 = arith.constant 0 : i32
    %c0_i32_0 = arith.constant 0 : i32
    %c0_i32_1 = arith.constant 0 : i32
    %c0_i32_2 = arith.constant 0 : i32
    return %arg0, %c0_i32, %c0_i32_0, %c0_i32_1 : i32, i32, i32, i32
  }
  func.func @transform_6(%arg0: i32) -> (i32, i32) {
    %c0_i32 = arith.constant 0 : i32
    %c0_i32_0 = arith.constant 0 : i32
    return %arg0, %c0_i32 : i32, i32
  }
  func.func @transform_7(%arg0: i32) -> (i32, i32) {
    %c0_i32 = arith.constant 0 : i32
    %c0_i32_0 = arith.constant 0 : i32
    %c0_i32_1 = arith.constant 0 : i32
    return %c0_i32, %c0_i32_0 : i32, i32
  }
  func.func @transform_8(%arg0: i32) -> (i32, i32) {
    %c0_i32 = arith.constant 0 : i32
    %c0_i32_0 = arith.constant 0 : i32
    %c0_i32_1 = arith.constant 0 : i32
    return %c0_i32, %c0_i32_0 : i32, i32
  }
  func.func @transform_9(%arg0: i32) -> (i32, i32) {
    %c0_i32 = arith.constant 0 : i32
    %c0_i32_0 = arith.constant 0 : i32
    %c0_i32_1 = arith.constant 0 : i32
    return %c0_i32, %c0_i32_0 : i32, i32
  }
  func.func @transform_10(%arg0: i32) -> (i32, i32) {
    %c0_i32 = arith.constant 0 : i32
    %c0_i32_0 = arith.constant 0 : i32
    %c0_i32_1 = arith.constant 0 : i32
    return %c0_i32, %c0_i32_0 : i32, i32
  }
  func.func @transform_11(%arg0: i32) -> (i32, i32) {
    %c0_i32 = arith.constant 0 : i32
    %c0_i32_0 = arith.constant 0 : i32
    %c0_i32_1 = arith.constant 0 : i32
    return %c0_i32, %c0_i32_0 : i32, i32
  }
  func.func @transform_12(%arg0: i32) -> (i32, i32) {
    %c0_i32 = arith.constant 0 : i32
    %c0_i32_0 = arith.constant 0 : i32
    %c0_i32_1 = arith.constant 0 : i32
    return %c0_i32, %c0_i32_0 : i32, i32
  }
  func.func @transform_13(%arg0: i32) -> (i32, i32) {
    %c0_i32 = arith.constant 0 : i32
    %c0_i32_0 = arith.constant 0 : i32
    %c0_i32_1 = arith.constant 0 : i32
    return %c0_i32, %c0_i32_0 : i32, i32
  }
  func.func @transform_14(%arg0: i32) -> (i32, i32) {
    %c0_i32 = arith.constant 0 : i32
    %c0_i32_0 = arith.constant 0 : i32
    %c0_i32_1 = arith.constant 0 : i32
    return %c0_i32, %c0_i32_0 : i32, i32
  }
  func.func @transform_15(%arg0: i32) -> (i32, i32) {
    %c0_i32 = arith.constant 0 : i32
    %c0_i32_0 = arith.constant 0 : i32
    %c0_i32_1 = arith.constant 0 : i32
    return %c0_i32, %c0_i32_0 : i32, i32
  }
  func.func @transform_16(%arg0: i32) -> (i32, i32) {
    %c0_i32 = arith.constant 0 : i32
    %c0_i32_0 = arith.constant 0 : i32
    %c0_i32_1 = arith.constant 0 : i32
    return %c0_i32, %c0_i32_0 : i32, i32
  }
  func.func @transform_17(%arg0: i32) -> (i32, i32) {
    %c0_i32 = arith.constant 0 : i32
    %c0_i32_0 = arith.constant 0 : i32
    %c0_i32_1 = arith.constant 0 : i32
    return %c0_i32, %c0_i32_0 : i32, i32
  }
  func.func @transform_18(%arg0: i32) -> (i32, i32) {
    %c0_i32 = arith.constant 0 : i32
    %c0_i32_0 = arith.constant 0 : i32
    %c0_i32_1 = arith.constant 0 : i32
    return %c0_i32, %c0_i32_0 : i32, i32
  }
  func.func @transform_19(%arg0: i32) -> (i32, i32) {
    %c0_i32 = arith.constant 0 : i32
    %c0_i32_0 = arith.constant 0 : i32
    return %arg0, %c0_i32 : i32, i32
  }
  func.func @transform_20(%arg0: i32) -> (i32, i32) {
    %c0_i32 = arith.constant 0 : i32
    %c0_i32_0 = arith.constant 0 : i32
    return %arg0, %c0_i32 : i32, i32
  }
}

</mosaic_0001>

<bundles_post_ra>
// kernel: tpu_custom_call.1
= control target key start
LH: loop header
LB: loop body
LE: loop exit
PB: predicated region body
PF: predicated region fallthrough
CT: control target
= control target key end

     0   :  { %s4170_s0 = inlined_call_operand.vmem [shape: f32[8,32], index: 0, kind: input, shape index: {}]   ;;  %s4171_s1 = inlined_call_operand.hbm [shape: f32[8,4,32], index: 1, kind: input, shape index: {}]   ;;  %s4172_s2 = inlined_call_operand.hbm [shape: f32[8,4,4,32], index: 2, kind: input, shape index: {}]   ;;  %s4173_s3 = inlined_call_operand.hbm [shape: f32[8,32], index: 3, kind: input, shape index: {}]   ;;  %s4174_s4 = inlined_call_operand.hbm [shape: f32[8,4,32], index: 4, kind: input, shape index: {}]   ;;  %s4175_s5 = inlined_call_operand.hbm [shape: f32[8,4,4,32], index: 5, kind: input, shape index: {}]   ;;  %s4176_s6 = inlined_call_operand.vmem [shape: s32[8,1], index: 6, kind: input, shape index: {}]   ;;  %s4177_s7 = inlined_call_operand.hbm [shape: f32[32,128], index: 7, kind: input, shape index: {}]   ;;  %s4178_s8 = inlined_call_operand.hbm [shape: f32[32,128], index: 8, kind: input, shape index: {}]   ;;  %s4179_s9 = inlined_call_operand.hbm [shape: f32[32,128], index: 9, kind: input, shape index: {}]   ;;  %s4180_s10 = inlined_call_operand.vmem [shape: f32[1,128], index: 10, kind: input, shape index: {}]   ;;  %s4181_s11 = inlined_call_operand.hbm [shape: f32[128,128], index: 11, kind: input, shape index: {}]   ;;  %s4182_s12 = inlined_call_operand.hbm [shape: f32[128,128], index: 12, kind: input, shape index: {}]   ;;  %s4183_s13 = inlined_call_operand.vmem [shape: f32[1,128], index: 13, kind: input, shape index: {}]   ;;  %s4184_s14 = inlined_call_operand.hbm [shape: f32[128,128], index: 14, kind: input, shape index: {}]   ;;  %s4185_s15 = inlined_call_operand.hbm [shape: f32[128,128], index: 15, kind: input, shape index: {}]   ;;  %s4186_s16 = inlined_call_operand.vmem [shape: f32[1,128], index: 16, kind: input, shape index: {}]   ;;  %s4187_s17 = inlined_call_operand.hbm [shape: f32[128,128], index: 17, kind: input, shape index: {}]   ;;  %s4188_s18 = inlined_call_operand.hbm [shape: f32[128,128], index: 18, kind: input, shape index: {}]   ;;  %s4189_s19 = inlined_call_operand.hbm [shape: f32[8,128], index: 19, kind: output, shape index: {0}]   ;;  %s4190_s20 = inlined_call_operand.vmem [shape: f32[8,1], index: 20, kind: output, shape index: {1}]  }
   0x1   :  { %4191 = sst [smem:[#allocation35_spill]] %s4170_s0 }
   0x2   :  { %4192 = sst [smem:[#allocation36_spill]] %s4171_s1 }
   0x3   :  { %4193 = sst [smem:[#allocation37_spill]] %s4172_s2 }
   0x4   :  { %4194 = sst [smem:[#allocation38_spill]] %s4173_s3 }
   0x5   :  { %4195 = sst [smem:[#allocation39_spill]] %s4174_s4 }
   0x6   :  { %26 = vsyncpa [#allocation3], 0 }
   0x7   :  { %27 = vsyncpa [#allocation6], 0 }
   0x8   :  { %28 = vsyncpa [#allocation9], 0 }
   0x9   :  { %29 = vsyncpa [#allocation12], 0 }
   0xa   :  { %30 = vsyncpa [#allocation15], 0 }
   0xb   :  { %31 = vsyncpa [#allocation18], 0 }
   0xc   :  { %32 = vsyncpa [#allocation21], 0 }
   0xd   :  { %33 = vsyncpa [#allocation24], 0 }
   0xe   :  { %34 = vsyncpa [#allocation4], 0  ;;  %s3420_s1 = smov [#allocation5]   ;;  %s3421_s23 = smov [#allocation8]  }
   0xf   :  { %s54_s22 = sshll.u32 %s3420_s1, 4  ;;  %s76_s24 = sshll.u32 %s3421_s23, 4  ;;  %s55_s22 = int_to_ptr.vmem [resolvable:$true] %s54_s22  ;;  %s77_s24 = int_to_ptr.vmem [resolvable:$true] %s76_s24 }
  0x10   :  { %s3110_s2 = scalar_lea.vmem %s55_s22, 2048  ;;  %p3115_p1 = scmp.lt.s32.totalorder %s55_s22, %s55_s22 }
  0x11   :  { %p3111_p0 = scmp.ne.s32.totalorder %s55_s22, %s3110_s2  ;;  %p3116_p2 = scmp.lt.s32.totalorder %s3110_s2, %s3110_s2 }
  0x13   :  { %p3117_p3 = por %p3116_p2, %p3115_p1 }
  0x15   :  { %p3118_p4 = pnand %p3117_p3, %p3111_p0 }
  0x17   :  { %3121 = shalt.err (!%p3118_p4)
}
  0x18   :  { %s3422_s25 = smov 64   ;;  %s3423_s3 = smov 4  }
  0x19   :  { %s4196_s28 = sld [smem:[#allocation37_spill]]  ;;  %s3130_s4 = scalar_lea.vmem %s77_s24, 512 }
  0x1a   :  { %p3131_p5 = scmp.ne.s32.totalorder %s77_s24, %s3130_s4  ;;  %p3135_p6 = scmp.lt.s32.totalorder %s77_s24, %s77_s24 }
  0x1b   :  { %p3136_p7 = scmp.lt.s32.totalorder %s3130_s4, %s3130_s4 }
  0x1d   :  { %p3137_p8 = por %p3136_p7, %p3135_p6 }
  0x1f   :  { %60 = dma.hbm_to_vmem [thread:$0]  %s4196_s28, 2048, %s55_s22, [#allocation6], %s3422_s25, %s3422_s25, %s3423_s3  }
  0x20   :  { %p3138_p9 = pnand %p3137_p8, %p3131_p5 }
  0x22   :  { %3141 = shalt.err (!%p3138_p9)
}
  0x23   :  { %s4197_s0 = sld [smem:[#allocation39_spill]]  ;;  %s3424_s21 = smov [#allocation11]  }
  0x24   :  { %s102_s1 = sshll.u32 %s3424_s21, 4  ;;  %s103_s1 = int_to_ptr.vmem [resolvable:$true] %s102_s1 }
  0x25   :  { %s3150_s23 = scalar_lea.vmem %s103_s1, 512  ;;  %p3155_p11 = scmp.lt.s32.totalorder %s103_s1, %s103_s1 }
  0x26   :  { %p3151_p10 = scmp.ne.s32.totalorder %s103_s1, %s3150_s23  ;;  %p3156_p12 = scmp.lt.s32.totalorder %s3150_s23, %s3150_s23 }
  0x28   :  { %p3157_p13 = por %p3156_p12, %p3155_p11 }
  0x29   :  { %82 = dma.hbm_to_vmem [thread:$0]  %s4197_s0, 512, %s77_s24, [#allocation9], %s3422_s25, %s3422_s25, %s3423_s3  }
  0x2a   :  { %p3158_p0 = pnand %p3157_p13, %p3151_p10 }
  0x2c   :  { %3161 = shalt.err (!%p3158_p0)
}
  0x2d   :  { %s3425_s22 = smov 128   ;;  %s3426_s2 = smov 8  }
  0x2e   :  { %108 = dma.hbm_to_vmem [thread:$0]  %s4177_s7, 512, %s103_s1, [#allocation12], %s3425_s22, %s3425_s22, %s3426_s2  }
  0x2f   :  { %s3427_s24 = smov [#allocation14]   ;;  %s3428_s4 = smov [#allocation17]  }
  0x30   :  { %s126_s28 = sshll.u32 %s3427_s24, 4  ;;  %s152_s29 = sshll.u32 %s3428_s4, 4  ;;  %s127_s28 = int_to_ptr.vmem [resolvable:$true] %s126_s28  ;;  %s153_s29 = int_to_ptr.vmem [resolvable:$true] %s152_s29 }
  0x31   :  { %s3170_s30 = scalar_lea.vmem %s127_s28, 512  ;;  %p3175_p2 = scmp.lt.s32.totalorder %s127_s28, %s127_s28 }
  0x32   :  { %p3171_p1 = scmp.ne.s32.totalorder %s127_s28, %s3170_s30  ;;  %p3176_p3 = scmp.lt.s32.totalorder %s3170_s30, %s3170_s30 }
  0x34   :  { %p3177_p4 = por %p3176_p3, %p3175_p2 }
  0x36   :  { %p3178_p5 = pnand %p3177_p4, %p3171_p1 }
  0x38   :  { %3181 = shalt.err (!%p3178_p5)
}
  0x39   :  { %132 = dma.hbm_to_vmem [thread:$0]  %s4179_s9, 512, %s127_s28, [#allocation15], %s3425_s22, %s3425_s22, %s3426_s2  }
  0x3a   :  { %s3190_s7 = scalar_lea.vmem %s153_s29, 2048  ;;  %p3195_p7 = scmp.lt.s32.totalorder %s153_s29, %s153_s29 }
  0x3b   :  { %p3191_p6 = scmp.ne.s32.totalorder %s153_s29, %s3190_s7  ;;  %p3196_p8 = scmp.lt.s32.totalorder %s3190_s7, %s3190_s7 }
  0x3d   :  { %p3197_p9 = por %p3196_p8, %p3195_p7 }
  0x3f   :  { %p3198_p10 = pnand %p3197_p9, %p3191_p6 }
  0x41   :  { %3201 = shalt.err (!%p3198_p10)
}
  0x42   :  { %158 = dma.hbm_to_vmem [thread:$0]  %s4182_s12, 2048, %s153_s29, [#allocation18], %s3425_s22, %s3425_s22, %s3426_s2  }
  0x43   :  { %s3429_s26 = smov [#allocation20]   ;;  %s3430_s24 = smov [#allocation2]  }
  0x44   :  { %s178_s27 = sshll.u32 %s3429_s26, 4  ;;  %s42_s9 = sshll.u32 %s3430_s24, 4  ;;  %s179_s27 = int_to_ptr.vmem [resolvable:$true] %s178_s27  ;;  %s43_s9 = int_to_ptr.vmem [resolvable:$true] %s42_s9 }
  0x45   :  { %s3210_s28 = scalar_lea.vmem %s179_s27, 2048  ;;  %p3215_p12 = scmp.lt.s32.totalorder %s179_s27, %s179_s27 }
  0x46   :  { %p3211_p11 = scmp.ne.s32.totalorder %s179_s27, %s3210_s28  ;;  %p3216_p13 = scmp.lt.s32.totalorder %s3210_s28, %s3210_s28 }
  0x48   :  { %p3217_p0 = por %p3216_p13, %p3215_p12 }
  0x4a   :  { %p3218_p1 = pnand %p3217_p0, %p3211_p11 }
  0x4c   :  { %3221 = shalt.err (!%p3218_p1)
}
  0x4d   :  { %184 = dma.hbm_to_vmem [thread:$0]  %s4185_s15, 2048, %s179_s27, [#allocation21], %s3425_s22, %s3425_s22, %s3426_s2  }
  0x4e   :  { %s3230_s12 = scalar_lea.vmem %s43_s9, 512  ;;  %p3235_p3 = scmp.lt.s32.totalorder %s43_s9, %s43_s9 }
  0x4f   :  { %p3231_p2 = scmp.ne.s32.totalorder %s43_s9, %s3230_s12  ;;  %p3236_p4 = scmp.lt.s32.totalorder %s3230_s12, %s3230_s12 }
  0x51   :  { %p3237_p5 = por %p3236_p4, %p3235_p3 }
  0x53   :  { %p3238_p6 = pnand %p3237_p5, %p3231_p2 }
  0x55   :  { %3241 = shalt.err (!%p3238_p6)
}
  0x56   :  { %s4198_s21 = sld [smem:[#allocation36_spill]]  ;;  %s3431_s7 = smov [#allocation7]  }
  0x57   :  { %s67_s1 = sshll.u32 %s3431_s7, 4  ;;  %s3432_s23 = smov [#allocation10]   ;;  %s68_s1 = int_to_ptr.vmem [resolvable:$true] %s67_s1 }
  0x58   :  { %s88_s15 = sshll.u32 %s3432_s23, 4  ;;  %s3250_s26 = scalar_lea.vmem %s68_s1, 128  ;;  %s89_s15 = int_to_ptr.vmem [resolvable:$true] %s88_s15 }
  0x59   :  { %p3251_p7 = scmp.ne.s32.totalorder %s68_s1, %s3250_s26  ;;  %p3255_p8 = scmp.lt.s32.totalorder %s68_s1, %s68_s1 }
  0x5a   :  { %p3256_p9 = scmp.lt.s32.totalorder %s3250_s26, %s3250_s26 }
  0x5c   :  { %48 = dma.hbm_to_vmem [thread:$0]  %s4198_s21, 512, %s43_s9, [#allocation3], %s3422_s25, %s3422_s25, %s3423_s3  }
  0x5d   :  { %p3257_p10 = por %p3256_p9, %p3255_p8 }
  0x5f   :  { %p3258_p11 = pnand %p3257_p10, %p3251_p7 }
  0x61   :  { %3261 = shalt.err (!%p3258_p11)
}
  0x62   :  { %s4199_s28 = sld [smem:[#allocation38_spill]]  ;;  %s3270_s4 = scalar_lea.vmem %s89_s15, 2048 }
  0x63   :  { %p3271_p12 = scmp.ne.s32.totalorder %s89_s15, %s3270_s4  ;;  %p3275_p13 = scmp.lt.s32.totalorder %s89_s15, %s89_s15 }
  0x64   :  { %p3276_p0 = scmp.lt.s32.totalorder %s3270_s4, %s3270_s4 }
  0x66   :  { %p3277_p1 = por %p3276_p0, %p3275_p13 }
  0x68   :  { %70 = dma.hbm_to_vmem [thread:$0]  %s4199_s28, 128, %s68_s1, [#allocation6]  }
  0x69   :  { %p3278_p2 = pnand %p3277_p1, %p3271_p12 }
  0x6b   :  { %3281 = shalt.err (!%p3278_p2)
}
  0x6c   :  { %94 = dma.hbm_to_vmem [thread:$0]  %s4175_s5, 2048, %s89_s15, [#allocation9], %s3422_s25, %s3422_s25, %s3423_s3  }
  0x6d   :  { %s3433_s12 = smov [#allocation13]   ;;  %s3434_s0 = smov [#allocation16]  }
  0x6e   :  { %s114_s29 = sshll.u32 %s3433_s12, 4  ;;  %s140_s21 = sshll.u32 %s3434_s0, 4  ;;  %s115_s29 = int_to_ptr.vmem [resolvable:$true] %s114_s29  ;;  %s141_s21 = int_to_ptr.vmem [resolvable:$true] %s140_s21 }
  0x6f   :  { %s3290_s7 = scalar_lea.vmem %s115_s29, 512  ;;  %p3295_p4 = scmp.lt.s32.totalorder %s115_s29, %s115_s29 }
  0x70   :  { %p3291_p3 = scmp.ne.s32.totalorder %s115_s29, %s3290_s7  ;;  %p3296_p5 = scmp.lt.s32.totalorder %s3290_s7, %s3290_s7 }
  0x72   :  { %p3297_p6 = por %p3296_p5, %p3295_p4 }
  0x74   :  { %p3298_p7 = pnand %p3297_p6, %p3291_p3 }
  0x76   :  { %3301 = shalt.err (!%p3298_p7)
}
  0x77   :  { %120 = dma.hbm_to_vmem [thread:$0]  %s4178_s8, 512, %s115_s29, [#allocation12], %s3425_s22, %s3425_s22, %s3426_s2  }
  0x78   :  { %s3310_s5 = scalar_lea.vmem %s141_s21, 2048  ;;  %p3315_p9 = scmp.lt.s32.totalorder %s141_s21, %s141_s21 }
  0x79   :  { %p3311_p8 = scmp.ne.s32.totalorder %s141_s21, %s3310_s5  ;;  %p3316_p10 = scmp.lt.s32.totalorder %s3310_s5, %s3310_s5 }
  0x7b   :  { %p3317_p11 = por %p3316_p10, %p3315_p9 }
  0x7d   :  { %p3318_p12 = pnand %p3317_p11, %p3311_p8 }
  0x7f   :  { %3321 = shalt.err (!%p3318_p12)
}
  0x80   :  { %146 = dma.hbm_to_vmem [thread:$0]  %s4181_s11, 2048, %s141_s21, [#allocation15], %s3425_s22, %s3425_s22, %s3426_s2  }
  0x81   :  { %s3435_s15 = smov [#allocation19]   ;;  %s3436_s27 = smov [#allocation22]  }
  0x82   :  { %s166_s26 = sshll.u32 %s3435_s15, 4  ;;  %s192_s8 = sshll.u32 %s3436_s27, 4  ;;  %s167_s26 = int_to_ptr.vmem [resolvable:$true] %s166_s26  ;;  %s193_s8 = int_to_ptr.vmem [resolvable:$true] %s192_s8 }
  0x83   :  { %s3330_s24 = scalar_lea.vmem %s167_s26, 2048  ;;  %p3335_p0 = scmp.lt.s32.totalorder %s167_s26, %s167_s26 }
  0x84   :  { %p3331_p13 = scmp.ne.s32.totalorder %s167_s26, %s3330_s24  ;;  %p3336_p1 = scmp.lt.s32.totalorder %s3330_s24, %s3330_s24 }
  0x86   :  { %p3337_p2 = por %p3336_p1, %p3335_p0 }
  0x88   :  { %p3338_p3 = pnand %p3337_p2, %p3331_p13 }
  0x8a   :  { %3341 = shalt.err (!%p3338_p3)
}
  0x8b   :  { %172 = dma.hbm_to_vmem [thread:$0]  %s4184_s14, 2048, %s167_s26, [#allocation18], %s3425_s22, %s3425_s22, %s3426_s2  }
  0x8c   :  { %s3350_s11 = scalar_lea.vmem %s193_s8, 2048  ;;  %p3355_p5 = scmp.lt.s32.totalorder %s193_s8, %s193_s8 }
  0x8d   :  { %p3351_p4 = scmp.ne.s32.totalorder %s193_s8, %s3350_s11  ;;  %p3356_p6 = scmp.lt.s32.totalorder %s3350_s11, %s3350_s11 }
  0x8f   :  { %p3357_p7 = por %p3356_p6, %p3355_p5 }
  0x91   :  { %p3358_p8 = pnand %p3357_p7, %p3351_p4 }
  0x93   :  { %3361 = shalt.err (!%p3358_p8)
}
  0x94   :  { %198 = dma.hbm_to_vmem [thread:$0]  %s4187_s17, 2048, %s193_s8, [#allocation21], %s3425_s22, %s3425_s22, %s3426_s2  }
  0x95   :  { %s3437_s12 = smov [#allocation23]  }
  0x96   :  { %s204_s29 = sshll.u32 %s3437_s12, 4  ;;  %s205_s29 = int_to_ptr.vmem [resolvable:$true] %s204_s29 }
  0x97   :  { %s3370_s0 = scalar_lea.vmem %s205_s29, 2048  ;;  %p3375_p10 = scmp.lt.s32.totalorder %s205_s29, %s205_s29 }
  0x98   :  { %p3371_p9 = scmp.ne.s32.totalorder %s205_s29, %s3370_s0  ;;  %p3376_p11 = scmp.lt.s32.totalorder %s3370_s0, %s3370_s0 }
  0x9a   :  { %p3377_p12 = por %p3376_p11, %p3375_p10 }
  0x9c   :  { %p3378_p13 = pnand %p3377_p12, %p3371_p9 }
  0x9e   :  { %3381 = shalt.err (!%p3378_p13)
}
  0x9f   :  { %210 = dma.hbm_to_vmem [thread:$0]  %s4188_s18, 2048, %s205_s29, [#allocation24], %s3425_s22, %s3425_s22, %s3426_s2  }
  0xa0   :  { %3402 = dma.done.wait [#allocation3], 512  }
  0xa1   :  { %3403 = vsyncadd [#allocation3], 4294966784 }
  0xa2   :  { %3404 = dma.done.wait [#allocation6], 2176  }
  0xa3   :  { %3405 = vsyncadd [#allocation6], 4294965120 }
  0xa4   :  { %3406 = dma.done.wait [#allocation9], 2560  }
  0xa5   :  { %3407 = vsyncadd [#allocation9], 4294964736 }
  0xa6   :  { %3408 = dma.done.wait [#allocation12], 1024  }
  0xa7   :  { %3409 = vsyncadd [#allocation12], 4294966272 }
  0xa8   :  { %3410 = dma.done.wait [#allocation15], 2560  }
  0xa9   :  { %3411 = vsyncadd [#allocation15], 4294964736 }
  0xaa   :  { %3412 = dma.done.wait [#allocation18], 4096  }
  0xab   :  { %3413 = vsyncadd [#allocation18], 4294963200 }
  0xac   :  { %3414 = dma.done.wait [#allocation21], 4096  }
  0xad   :  { %3415 = vsyncadd [#allocation21], 4294963200 }
  0xae   :  { %3416 = dma.done.wait [#allocation24], 2048  }
  0xaf   :  { %3417 = vsyncadd [#allocation24], 4294965248  ;;  %v3438_v0 = vmov 0.0   ;;  %vm3439_vm0 = vmmov 0   ;;  %v256_v1 = vld [vmem:[#allocation11 + $0x18] sm:$0xff]  ;;  %v3634_v3 = vld [vmem:[#allocation11 + $0x10] sm:$0xff] }
  0xb0   :  { %2748 = vmatprep.subr.mxu1 %v3438_v0  ;;  %2737 = vmatprep.subr.mxu0 %v3438_v0  ;;  %v260_v2 = vld [vmem:[#allocation13 + $0x18] sm:$0xff]  ;;  %v259_v4 = vld [vmem:[#allocation13 + $0x10] sm:$0xff]  ;;  %v3636_v5 = vld [vmem:[#allocation11 + $0x8] sm:$0xff]  ;;  %vm354_vm1 = vcmask 261120   ;;  %s4200_s22 = sld [smem:[#allocation35_spill]]  ;;  %vm275_vm2 = vcmask 257024  }
  0xb1   :  { %2756 = vmatprep.mubr.msk.f32.mxu1 %vm3439_vm0, %v3438_v0  ;;  %2745 = vmatprep.mubr.msk.f32.mxu0 %vm3439_vm0, %v3438_v0  ;;  %v258_v6 = vld [vmem:[#allocation13 + $0x8] sm:$0xff]  ;;  %v3640_v7 = vld [vmem:[#allocation11] sm:$0xff]  ;;  %v267_v10 = vld [vmem:[#allocation2] sm:$0xf]  ;;  %vm340_vm3 = vcmask 1041409   ;;  %vm342_vm4 = vcmask 1042434  }
  0xb2   :  { %2749 = vmatpush3.msra.mxu1 %v256_v1  ;;  %2738 = vmatpush3.msra.mxu0 %v260_v2  ;;  %v257_v8 = vld [vmem:[#allocation13] sm:$0xff]  ;;  %v268_v11 = vld [vmem:[#allocation2 + $0x4] sm:$0xf]  ;;  %v3652_v14 = vld [vmem:[#allocation2 + $0x10] sm:$0xf]  ;;  %v276_v21 = vsel %vm275_vm2, %v267_v10, 0.0 }
  0xb3   :  { %2750 = vmatprep.subr.mxu1 %v3438_v0  ;;  %2739 = vmatprep.subr.mxu0 %v3438_v0  ;;  %v3648_v12 = vld [vmem:[#allocation2 + $0x8] sm:$0xf]  ;;  %v3650_v13 = vld [vmem:[#allocation2 + $0xc] sm:$0xf]  ;;  %v3655_v15 = vld [vmem:[#allocation2 + $0x14] sm:$0xf]  ;;  %v925_v18 = vcombine.low %v267_v10, %v268_v11 }
  0xb4   :  { %2751 = vmatpush3.msra.mxu1 %v3634_v3  ;;  %2740 = vmatpush3.msra.mxu0 %v259_v4  ;;  %v3657_v16 = vld [vmem:[#allocation2 + $0x18] sm:$0xf]  ;;  %v3659_v17 = vld [vmem:[#allocation2 + $0x1c] sm:$0xf]  ;;  %v926_v19 = vcombine.low %v3648_v12, %v3650_v13  ;;  %v3665_v20 = vld [vmem:[#allocation14 + $0x18] sm:$0xff]  ;;  %v283_v22 = vsel %vm275_vm2, %v268_v11, 0.0 }
  0xb5   :  { %2752 = vmatprep.subr.mxu1 %v3438_v0  ;;  %2741 = vmatprep.subr.mxu0 %v3438_v0  ;;  %v290_v23 = vsel %vm275_vm2, %v3648_v12, 0.0  ;;  %v297_v24 = vsel %vm275_vm2, %v3650_v13, 0.0  ;;  %v277_v25 = vrot.slane %v276_v21, 4  ;;  %v284_v26 = vrot.slane %v283_v22, 4  ;;  %v1114_v57 = vld [vmem:[#allocation16 + $0x78] sm:$0xff]  ;;  %v1112_v12 = vld [vmem:[#allocation16 + $0x68] sm:$0xff] }
  0xb6   :  { %v266_v9 = vld [vmem:[%s4200_s22] sm:$0xff]  ;;  %2753 = vmatpush3.msra.mxu1 %v3636_v5  ;;  %2742 = vmatpush3.msra.mxu0 %v258_v6  ;;  %v291_v27 = vrot.slane %v290_v23, 4  ;;  %v298_v28 = vrot.slane %v297_v24, 4  ;;  %v304_v29 = vsel %vm275_vm2, %v3652_v14, 0.0  ;;  %v311_v30 = vsel %vm275_vm2, %v3655_v15, 0.0 }
  0xb7   :  { %2754 = vmatprep.subr.mxu1 %v3438_v0  ;;  %2743 = vmatprep.subr.mxu0 %v3438_v0  ;;  %v318_v31 = vsel %vm275_vm2, %v3657_v16, 0.0  ;;  %v325_v32 = vsel %vm275_vm2, %v3659_v17, 0.0  ;;  %v278_v33 = vadd.f32 %v277_v25, %v276_v21  ;;  %v285_v34 = vadd.f32 %v284_v26, %v283_v22  ;;  %v509_v4 = vld [vmem:[#allocation5 + $0x4] sm:$0xf]  ;;  %v510_v22 = vld [vmem:[#allocation5 + $0x8] sm:$0xf] }
  0xb8   :  { %2755 = vmatpush3.msra.mxu1 %v3640_v7  ;;  %2744 = vmatpush3.msra.mxu0 %v257_v8  ;;  %v292_v35 = vadd.f32 %v291_v27, %v290_v23  ;;  %v305_v36 = vrot.slane %v304_v29, 4  ;;  %v299_v37 = vadd.f32 %v298_v28, %v297_v24  ;;  %v312_v38 = vrot.slane %v311_v30, 4  ;;  %v511_v23 = vld [vmem:[#allocation5 + $0xc] sm:$0xf]  ;;  %v512_v24 = vld [vmem:[#allocation5 + $0x10] sm:$0xf] }
  0xb9   :  { %2773 = vmatprep.subr.mxu1 %v256_v1  ;;  %2757 = vmatmul.mubr.msk.f32.vlgmr.msra.gmra.mxu1 %vm354_vm1, %v266_v9  ;;  %v319_v39 = vrot.slane %v318_v31, 4  ;;  %v326_v40 = vrot.slane %v325_v32, 4  ;;  %vm344_vm5 = vcmask 1043459   ;;  %v279_v41 = vrot.slane %v278_v33, 2 }
  0xba   :  { %2774 = vmatpush3.msra.mxu1 %v256_v1  ;;  %2759 = vmatprep.subr.mxu0 %v3665_v20  ;;  %v286_v42 = vrot.slane %v285_v34, 2  ;;  %v293_v43 = vrot.slane %v292_v35, 2  ;;  %v306_v44 = vadd.f32 %v305_v36, %v304_v29  ;;  %vm346_vm6 = vcmask 1044484  }
  0xbb   :  { %2775 = vmatprep.subr.mxu1 %v3634_v3  ;;  %2781 = vmatprep.mubr.msk.f32.mxu1 %vm354_vm1, %v925_v18  ;;  %v300_v45 = vrot.slane %v299_v37, 2  ;;  %v313_v46 = vadd.f32 %v312_v38, %v311_v30  ;;  %v320_v47 = vadd.f32 %v319_v39, %v318_v31  ;;  %v327_v48 = vadd.f32 %v326_v40, %v325_v32  ;;  %v1111_v31 = vld [vmem:[#allocation16 + $0x60] sm:$0xff] }
  0xbc   :  { %2776 = vmatpush3.msra.mxu1 %v3634_v3  ;;  %vm348_vm7 = vcmask 1045509   ;;  %v280_v49 = vadd.f32 %v279_v41, %v278_v33  ;;  %v287_v50 = vadd.f32 %v286_v42, %v285_v34  ;;  %v294_v51 = vadd.f32 %v293_v43, %v292_v35  ;;  %v508_v3 = vld [vmem:[#allocation5] sm:$0xf]  ;;  %v513_v33 = vld [vmem:[#allocation5 + $0x14] sm:$0xf] }
  0xbd   :  { %2777 = vmatprep.subr.mxu1 %v3636_v5  ;;  %v307_v52 = vrot.slane %v306_v44, 2  ;;  %vm350_vm8 = vcmask 1046534   ;;  %v301_v53 = vadd.f32 %v300_v45, %v299_v37  ;;  %v314_v54 = vrot.slane %v313_v46, 2  ;;  %v1110_v41 = vld [vmem:[#allocation16 + $0x58] sm:$0xff]  ;;  %v514_v43 = vld [vmem:[#allocation5 + $0x18] sm:$0xf] }
  0xbe   :  { %2778 = vmatpush3.msra.mxu1 %v3636_v5  ;;  %v321_v55 = vrot.slane %v320_v47, 2  ;;  %v328_v56 = vrot.slane %v327_v48, 2  ;;  %vm352_vm9 = vcmask 1047559   ;;  %v281_v58 = vrot.slane %v280_v49, 1  ;;  %v1113_v5 = vld [vmem:[#allocation16 + $0x70] sm:$0xff] }
  0xbf   :  { %2779 = vmatprep.subr.mxu1 %v3640_v7  ;;  %v288_v59 = vrot.slane %v287_v50, 1  ;;  %v295_v60 = vrot.slane %v294_v51, 1  ;;  %v308_v61 = vadd.f32 %v307_v52, %v306_v44  ;;  %v302_v62 = vrot.slane %v301_v53, 1 }
  0xc0   :  { %2780 = vmatpush3.msra.mxu1 %v3640_v7  ;;  %v315_v63 = vadd.f32 %v314_v54, %v313_v46  ;;  %v322_v1 = vadd.f32 %v321_v55, %v320_v47  ;;  %v329_v2 = vadd.f32 %v328_v56, %v327_v48  ;;  %v282_v6 = vadd.f32 %v281_v58, %v280_v49  ;;  %v515_v54 = vld [vmem:[#allocation5 + $0x1c] sm:$0xf] }
  0xc1   :  { %2782 = vmatmul.mubr.msk.f32.vlgmr.msra.gmra.mxu1 %vm354_vm1, %v926_v19  ;;  %2822 = vmatprep.subr.mxu1 %v3438_v0  ;;  %v289_v8 = vadd.f32 %v288_v59, %v287_v50  ;;  %v296_v9 = vadd.f32 %v295_v60, %v294_v51  ;;  %v309_v10 = vrot.slane %v308_v61, 1  ;;  %v303_v7 = vadd.f32 %v302_v62, %v301_v53  ;;  %v1109_v51 = vld [vmem:[#allocation16 + $0x50] sm:$0xff]  ;;  %v1108_v62 = vld [vmem:[#allocation16 + $0x48] sm:$0xff] }
  0xc2   :  { %2823 = vmatpush3.msra.mxu1 %v1114_v57  ;;  %v316_v11 = vrot.slane %v315_v63, 1  ;;  %v323_v18 = vrot.slane %v322_v1, 1  ;;  %v330_v21 = vrot.slane %v329_v2, 1  ;;  %v540_v25 = vsel %vm275_vm2, %v508_v3, 0.0  ;;  %v263_v53 = vld [vmem:[#allocation14 + $0x10] sm:$0xff] }
  0xc3   :  { %2824 = vmatprep.subr.mxu1 %v3438_v0  ;;  %v310_v13 = vadd.f32 %v309_v10, %v308_v61  ;;  %v341_v19 = vsel %vm340_vm3, %v289_v8, %v282_v6  ;;  %v547_v26 = vsel %vm275_vm2, %v509_v4, 0.0  ;;  %v541_v34 = vrot.slane %v540_v25, 4  ;;  %v1107_v10 = vld [vmem:[#allocation16 + $0x40] sm:$0xff] }
  0xc4   :  { %2825 = vmatpush3.msra.mxu1 %v1113_v5  ;;  %v317_v27 = vadd.f32 %v316_v11, %v315_v63  ;;  %v324_v28 = vadd.f32 %v323_v18, %v322_v1  ;;  %v331_v29 = vadd.f32 %v330_v21, %v329_v2  ;;  %v343_v30 = vsel %vm342_vm4, %v296_v9, %v341_v19  ;;  %v262_v63 = vld [vmem:[#allocation14 + $0x8] sm:$0xff] }
  0xc5   :  { %2826 = vmatprep.subr.mxu1 %v3438_v0  ;;  %v345_v32 = vsel %vm344_vm5, %v303_v7, %v343_v30  ;;  %v548_v35 = vrot.slane %v547_v26, 4  ;;  %v554_v36 = vsel %vm275_vm2, %v510_v22, 0.0  ;;  %v561_v39 = vsel %vm275_vm2, %v511_v23, 0.0  ;;  %v261_v7 = vld [vmem:[#allocation14] sm:$0xff]  ;;  %v516_v23 = vld [vmem:[#allocation5 + $0x20] sm:$0xf] }
  0xc6   :  { %2827 = vmatpush3.msra.mxu1 %v1112_v12  ;;  %v347_v37 = vsel %vm346_vm6, %v310_v13, %v345_v32  ;;  %v555_v38 = vrot.slane %v554_v36, 4  ;;  %v568_v40 = vsel %vm275_vm2, %v512_v24, 0.0  ;;  %v542_v44 = vadd.f32 %v541_v34, %v540_v25  ;;  %v1106_v24 = vld [vmem:[#allocation16 + $0x38] sm:$0xff]  ;;  %v1105_v34 = vld [vmem:[#allocation16 + $0x30] sm:$0xff] }
  0xc7   :  { %2828 = vmatprep.subr.mxu1 %v3438_v0  ;;  %v349_v42 = vsel %vm348_vm7, %v317_v27, %v347_v37  ;;  %v549_v45 = vadd.f32 %v548_v35, %v547_v26  ;;  %v562_v46 = vrot.slane %v561_v39, 4  ;;  %v569_v49 = vrot.slane %v568_v40, 4 }
  0xc8   :  { %2829 = vmatpush3.msra.mxu1 %v1111_v31  ;;  %v351_v47 = vsel %vm350_vm8, %v324_v28, %v349_v42  ;;  %v556_v48 = vadd.f32 %v555_v38, %v554_v36  ;;  %v575_v50 = vsel %vm275_vm2, %v513_v33, 0.0  ;;  %v543_v55 = vrot.slane %v542_v44, 2  ;;  %v517_v33 = vld [vmem:[#allocation5 + $0x24] sm:$0xf]  ;;  %v518_v38 = vld [vmem:[#allocation5 + $0x28] sm:$0xf] }
  0xc9   :  { %2830 = vmatprep.subr.mxu1 %v3438_v0  ;;  %v353_v52 = vsel %vm352_vm9, %v331_v29, %v351_v47  ;;  %v550_v56 = vrot.slane %v549_v45, 2  ;;  %v563_v57 = vadd.f32 %v562_v46, %v561_v39  ;;  %v570_v59 = vadd.f32 %v569_v49, %v568_v40 }
  0xca   :  { %2831 = vmatpush3.msra.mxu1 %v1110_v41  ;;  %2746 = vmatmul.mubr.msk.f32.vlgmr.msra.gmra.mxu0 %vm354_vm1, %v353_v52  ;;  %v557_v58 = vrot.slane %v556_v48, 2  ;;  %v576_v60 = vrot.slane %v575_v50, 4  ;;  %v582_v61 = vsel %vm275_vm2, %v514_v43, 0.0  ;;  %v544_v1 = vadd.f32 %v543_v55, %v542_v44  ;;  %v519_v44 = vld [vmem:[#allocation5 + $0x2c] sm:$0xf] }
  0xcb   :  { %2832 = vmatprep.subr.mxu1 %v3438_v0  ;;  %2760 = vmatpush3.msra.mxu0 %v3665_v20  ;;  %v551_v2 = vadd.f32 %v550_v56, %v549_v45  ;;  %v564_v3 = vrot.slane %v563_v57, 2  ;;  %v583_v4 = vrot.slane %v582_v61, 4  ;;  %v571_v6 = vrot.slane %v570_v59, 2  ;;  %v1104_v45 = vld [vmem:[#allocation16 + $0x28] sm:$0xff] }
  0xcc   :  { %2833 = vmatpush3.msra.mxu1 %v1109_v51  ;;  %2761 = vmatprep.subr.mxu0 %v263_v53  ;;  %v558_v5 = vadd.f32 %v557_v58, %v556_v48  ;;  %v577_v8 = vadd.f32 %v576_v60, %v575_v50  ;;  %v589_v9 = vsel %vm275_vm2, %v515_v54, 0.0  ;;  %v545_v11 = vrot.slane %v544_v1, 1 }
  0xcd   :  { %2834 = vmatprep.subr.mxu1 %v3438_v0  ;;  %2762 = vmatpush3.msra.mxu0 %v263_v53  ;;  %v552_v18 = vrot.slane %v551_v2, 1  ;;  %v565_v20 = vadd.f32 %v564_v3, %v563_v57  ;;  %v584_v21 = vadd.f32 %v583_v4, %v582_v61  ;;  %v572_v12 = vadd.f32 %v571_v6, %v570_v59  ;;  %v520_v53 = vld [vmem:[#allocation5 + $0x30] sm:$0xf]  ;;  %v521_v61 = vld [vmem:[#allocation5 + $0x34] sm:$0xf] }
  0xce   :  { %2835 = vmatpush3.msra.mxu1 %v1108_v62  ;;  %2763 = vmatprep.subr.mxu0 %v262_v63  ;;  %v559_v22 = vrot.slane %v558_v5, 1  ;;  %v578_v13 = vrot.slane %v577_v8, 2  ;;  %v590_v19 = vrot.slane %v589_v9, 4  ;;  %v546_v25 = vadd.f32 %v545_v11, %v544_v1  ;;  %v522_v62 = vld [vmem:[#allocation5 + $0x38] sm:$0xf] }
  0xcf   :  { %2836 = vmatprep.subr.mxu1 %v3438_v0  ;;  %2764 = vmatpush3.msra.mxu0 %v262_v63  ;;  %v553_v26 = vadd.f32 %v552_v18, %v551_v2  ;;  %v566_v27 = vrot.slane %v565_v20, 1  ;;  %v585_v28 = vrot.slane %v584_v21, 2  ;;  %v573_v30 = vrot.slane %v572_v12, 1 }
  0xd0   :  { %2837 = vmatpush3.msra.mxu1 %v1107_v10  ;;  %2765 = vmatprep.subr.mxu0 %v261_v7  ;;  %v560_v29 = vadd.f32 %v559_v22, %v558_v5  ;;  %v579_v31 = vadd.f32 %v578_v13, %v577_v8  ;;  %v591_v32 = vadd.f32 %v590_v19, %v589_v9  ;;  %v596_v39 = vsel %vm275_vm2, %v516_v23, 0.0 }
  0xd1   :  { %2838 = vmatprep.subr.mxu1 %v3438_v0  ;;  %2766 = vmatpush3.msra.mxu0 %v261_v7  ;;  %v567_v35 = vadd.f32 %v566_v27, %v565_v20  ;;  %v586_v36 = vadd.f32 %v585_v28, %v584_v21  ;;  %v796_v37 = vsel %vm340_vm3, %v553_v26, %v546_v25  ;;  %v597_v48 = vrot.slane %v596_v39, 4  ;;  %v523_v7 = vld [vmem:[#allocation5 + $0x3c] sm:$0xf] }
  0xd2   :  { %2839 = vmatpush3.msra.mxu1 %v1106_v24  ;;  %v574_v40 = vadd.f32 %v573_v30, %v572_v12  ;;  %v580_v41 = vrot.slane %v579_v31, 1  ;;  %v592_v42 = vrot.slane %v591_v32, 2  ;;  %v797_v43 = vsel %vm342_vm4, %v560_v29, %v796_v37  ;;  %2787 = vmatprep.subr.mxu0 %v3438_v0 }
  0xd3   :  { %2840 = vmatprep.subr.mxu1 %v3438_v0  ;;  %v587_v46 = vrot.slane %v586_v36, 1  ;;  %v798_v47 = vsel %vm344_vm5, %v567_v35, %v797_v43  ;;  %v603_v49 = vsel %vm275_vm2, %v517_v33, 0.0  ;;  %v598_v56 = vadd.f32 %v597_v48, %v596_v39  ;;  %v524_v43 = vld [vmem:[#allocation5 + $0x40] sm:$0xf] }
  0xd4   :  { %2841 = vmatpush3.msra.mxu1 %v1105_v34  ;;  %v581_v50 = vadd.f32 %v580_v41, %v579_v31  ;;  %v593_v51 = vadd.f32 %v592_v42, %v591_v32  ;;  %v799_v52 = vsel %vm346_vm6, %v574_v40, %v798_v47  ;;  %v604_v54 = vrot.slane %v603_v49, 4 }
  0xd5   :  { %2842 = vmatprep.subr.mxu1 %v3438_v0  ;;  %v588_v55 = vadd.f32 %v587_v46, %v586_v36  ;;  %v610_v57 = vsel %vm275_vm2, %v518_v38, 0.0  ;;  %v617_v58 = vsel %vm275_vm2, %v519_v44, 0.0  ;;  %v599_v3 = vrot.slane %v598_v56, 2 }
  0xd6   :  { %2843 = vmatpush3.msra.mxu1 %v1104_v45  ;;  %v594_v59 = vrot.slane %v593_v51, 1  ;;  %v800_v60 = vsel %vm348_vm7, %v581_v50, %v799_v52  ;;  %v605_v63 = vadd.f32 %v604_v54, %v603_v49  ;;  %v611_v1 = vrot.slane %v610_v57, 4  ;;  %v525_v52 = vld [vmem:[#allocation5 + $0x44] sm:$0xf] }
  0xd7   :  { %2844 = vmatprep.subr.mxu1 %v3438_v0  ;;  %v801_v2 = vsel %vm350_vm8, %v588_v55, %v800_v60  ;;  %v618_v4 = vrot.slane %v617_v58, 4  ;;  %v624_v5 = vsel %vm275_vm2, %v520_v53, 0.0  ;;  %v600_v11 = vadd.f32 %v599_v3, %v598_v56  ;;  %v526_v53 = vld [vmem:[#allocation5 + $0x48] sm:$0xf]  ;;  %v528_v60 = vld [vmem:[#allocation5 + $0x50] sm:$0xf] }
  0xd8   :  { %v595_v6 = vadd.f32 %v594_v59, %v593_v51  ;;  %v606_v8 = vrot.slane %v605_v63, 2  ;;  %v612_v9 = vadd.f32 %v611_v1, %v610_v57  ;;  %v625_v10 = vrot.slane %v624_v5, 4 }
  0xd9   :  { %v619_v18 = vadd.f32 %v618_v4, %v617_v58  ;;  %v631_v20 = vsel %vm275_vm2, %v521_v61, 0.0  ;;  %v638_v21 = vsel %vm275_vm2, %v522_v62, 0.0  ;;  %v601_v23 = vrot.slane %v600_v11, 1 }
  0xda   :  { %v802_v22 = vsel %vm352_vm9, %v595_v6, %v801_v2  ;;  %v607_v12 = vadd.f32 %v606_v8, %v605_v63  ;;  %v613_v13 = vrot.slane %v612_v9, 2  ;;  %v626_v19 = vadd.f32 %v625_v10, %v624_v5  ;;  %v529_v6 = vld [vmem:[#allocation5 + $0x54] sm:$0xf] }
  0xdb   :  { %2767 = vmatprep.mubr.msk.f32.mxu0 %vm354_vm1, %v802_v22  ;;  %v620_v24 = vrot.slane %v619_v18, 2  ;;  %v632_v25 = vrot.slane %v631_v20, 4  ;;  %v639_v26 = vrot.slane %v638_v21, 4  ;;  %v645_v30 = vsel %vm275_vm2, %v523_v7, 0.0 }
  0xdc   :  { %v608_v27 = vrot.slane %v607_v12, 1  ;;  %v614_v28 = vadd.f32 %v613_v13, %v612_v9  ;;  %v627_v29 = vrot.slane %v626_v19, 2  ;;  %v602_v31 = vadd.f32 %v601_v23, %v600_v11 }
  0xdd   :  { %v621_v32 = vadd.f32 %v620_v24, %v619_v18  ;;  %v633_v33 = vadd.f32 %v632_v25, %v631_v20  ;;  %v640_v34 = vadd.f32 %v639_v26, %v638_v21  ;;  %v646_v38 = vrot.slane %v645_v30, 4 }
  0xde   :  { %v609_v35 = vadd.f32 %v608_v27, %v607_v12  ;;  %v615_v36 = vrot.slane %v614_v28, 1  ;;  %v628_v37 = vadd.f32 %v627_v29, %v626_v19  ;;  %v927_v42 = vcombine.low %v3652_v14, %v3655_v15  ;;  %v527_v15 = vld [vmem:[#allocation5 + $0x4c] sm:$0xf]  ;;  %v530_v12 = vld [vmem:[#allocation5 + $0x58] sm:$0xf] }
  0xdf   :  { %v622_v39 = vrot.slane %v621_v32, 1  ;;  %v634_v40 = vrot.slane %v633_v33, 2  ;;  %v641_v41 = vrot.slane %v640_v34, 2  ;;  %v647_v46 = vadd.f32 %v646_v38, %v645_v30 }
  0xe0   :  { %v616_v44 = vadd.f32 %v615_v36, %v614_v28  ;;  %v629_v45 = vrot.slane %v628_v37, 1  ;;  %v803_v47 = vsel %vm340_vm3, %v609_v35, %v602_v31  ;;  %2784 = vmatprep.mubr.msk.f32.mxu1 %vm354_vm1, %v927_v42  ;;  %v928_v51 = vcombine.low %v3657_v16, %v3659_v17  ;;  %v531_v28 = vld [vmem:[#allocation5 + $0x5c] sm:$0xf] }
  0xe1   :  { %v623_v48 = vadd.f32 %v622_v39, %v621_v32  ;;  %v635_v49 = vadd.f32 %v634_v40, %v633_v33  ;;  %v642_v50 = vadd.f32 %v641_v41, %v640_v34  ;;  %v648_v55 = vrot.slane %v647_v46, 2  ;;  %v532_v40 = vld [vmem:[#allocation5 + $0x60] sm:$0xf] }
  0xe2   :  { %v630_v54 = vadd.f32 %v629_v45, %v628_v37  ;;  %v804_v14 = vsel %vm342_vm4, %v616_v44, %v803_v47  ;;  %v652_v56 = vsel %vm275_vm2, %v524_v43, 0.0  ;;  %2785 = vmatmul.mubr.msk.f32.gmra.mxu1 %vm354_vm1, %v928_v51  ;;  %v659_v17 = vsel %vm275_vm2, %v525_v52, 0.0 }
  0xe3   :  { %v636_v57 = vrot.slane %v635_v49, 1  ;;  %v643_v58 = vrot.slane %v642_v50, 1  ;;  %v805_v59 = vsel %vm344_vm5, %v623_v48, %v804_v14  ;;  %v653_v61 = vrot.slane %v652_v56, 4  ;;  %2854 = vmatprep.mubr.msk.f32.mxu1 %vm3439_vm0, %v3438_v0 }
  0xe4   :  { %v649_v62 = vadd.f32 %v648_v55, %v647_v46  ;;  %v806_v16 = vsel %vm346_vm6, %v630_v54, %v805_v59  ;;  %v666_v63 = vsel %vm275_vm2, %v526_v53, 0.0  ;;  %v660_v4 = vrot.slane %v659_v17, 4 }
  0xe5   :  { %v637_v1 = vadd.f32 %v636_v57, %v635_v49  ;;  %v644_v2 = vadd.f32 %v643_v58, %v642_v50  ;;  %v654_v3 = vadd.f32 %v653_v61, %v652_v56  ;;  %v667_v8 = vrot.slane %v666_v63, 4 }
  0xe6   :  { %v650_v5 = vrot.slane %v649_v62, 1  ;;  %v673_v9 = vsel %vm275_vm2, %v527_v15, 0.0  ;;  %v680_v10 = vsel %vm275_vm2, %v528_v60, 0.0  ;;  %v661_v18 = vadd.f32 %v660_v4, %v659_v17  ;;  %v533_v15 = vld [vmem:[#allocation5 + $0x64] sm:$0xf] }
  0xe7   :  { %v807_v7 = vsel %vm348_vm7, %v637_v1, %v806_v16  ;;  %v655_v11 = vrot.slane %v654_v3, 2  ;;  %v674_v20 = vrot.slane %v673_v9, 4  ;;  %v668_v13 = vadd.f32 %v667_v8, %v666_v63  ;;  %v534_v17 = vld [vmem:[#allocation5 + $0x68] sm:$0xf]  ;;  %v535_v63 = vld [vmem:[#allocation5 + $0x6c] sm:$0xf] }
  0xe8   :  { %v651_v21 = vadd.f32 %v650_v5, %v649_v62  ;;  %v808_v22 = vsel %vm350_vm8, %v644_v2, %v807_v7  ;;  %v681_v19 = vrot.slane %v680_v10, 4  ;;  %v662_v24 = vrot.slane %v661_v18, 2 }
  0xe9   :  { %v656_v23 = vadd.f32 %v655_v11, %v654_v3  ;;  %v675_v25 = vadd.f32 %v674_v20, %v673_v9  ;;  %v687_v26 = vsel %vm275_vm2, %v529_v6, 0.0  ;;  %v669_v29 = vrot.slane %v668_v13, 2  ;;  %v536_v9 = vld [vmem:[#allocation5 + $0x70] sm:$0xf] }
  0xea   :  { %v809_v27 = vsel %vm352_vm9, %v651_v21, %v808_v22  ;;  %v682_v30 = vadd.f32 %v681_v19, %v680_v10  ;;  %v688_v31 = vrot.slane %v687_v26, 4  ;;  %v663_v33 = vadd.f32 %v662_v24, %v661_v18 }
  0xeb   :  { %2768 = vmatmul.mubr.msk.f32.vlgmr.msra.gmra.mxu0 %vm354_vm1, %v809_v27  ;;  %v657_v32 = vrot.slane %v656_v23, 1  ;;  %v676_v34 = vrot.slane %v675_v25, 2  ;;  %v694_v35 = vsel %vm275_vm2, %v530_v12, 0.0  ;;  %v670_v36 = vadd.f32 %v669_v29, %v668_v13  ;;  %v537_v12 = vld [vmem:[#allocation5 + $0x74] sm:$0xf] }
  0xec   :  { %v683_v37 = vrot.slane %v682_v30, 2  ;;  %v689_v38 = vadd.f32 %v688_v31, %v687_v26  ;;  %v695_v39 = vrot.slane %v694_v35, 4  ;;  %v664_v42 = vrot.slane %v663_v33, 1 }
  0xed   :  { %v658_v41 = vadd.f32 %v657_v32, %v656_v23  ;;  %v677_v43 = vadd.f32 %v676_v34, %v675_v25  ;;  %v701_v44 = vsel %vm275_vm2, %v531_v28, 0.0  ;;  %v671_v45 = vrot.slane %v670_v36, 1  ;;  %v538_v28 = vld [vmem:[#allocation5 + $0x78] sm:$0xf]  ;;  %v1103_v32 = vld [vmem:[#allocation16 + $0x20] sm:$0xff] }
  0xee   :  { %v684_v46 = vadd.f32 %v683_v37, %v682_v30  ;;  %v690_v47 = vrot.slane %v689_v38, 2  ;;  %v696_v48 = vadd.f32 %v695_v39, %v694_v35  ;;  %v665_v49 = vadd.f32 %v664_v42, %v663_v33  ;;  %2845 = vmatpush3.msra.mxu1 %v1103_v32  ;;  %v539_v37 = vld [vmem:[#allocation5 + $0x7c] sm:$0xf]  ;;  %v1122_v32 = vld [vmem:[#allocation17 + $0x38] sm:$0xff] }
  0xef   :  { %v678_v50 = vrot.slane %v677_v43, 1  ;;  %v702_v51 = vrot.slane %v701_v44, 4  ;;  %v708_v52 = vsel %vm275_vm2, %v532_v40, 0.0  ;;  %v672_v53 = vadd.f32 %v671_v45, %v670_v36  ;;  %2846 = vmatprep.subr.mxu1 %v3438_v0 }
  0xf0   :  { %v685_v54 = vrot.slane %v684_v46, 1  ;;  %v691_v55 = vadd.f32 %v690_v47, %v689_v38  ;;  %v697_v14 = vrot.slane %v696_v48, 2  ;;  %v810_v58 = vsel %vm340_vm3, %v665_v49, %v658_v41 }
  0xf1   :  { %v679_v56 = vadd.f32 %v678_v50, %v677_v43  ;;  %v703_v57 = vadd.f32 %v702_v51, %v701_v44  ;;  %v709_v59 = vrot.slane %v708_v52, 4  ;;  %v811_v16 = vsel %vm342_vm4, %v672_v53, %v810_v58 }
  0xf2   :  { %v686_v60 = vadd.f32 %v685_v54, %v684_v46  ;;  %v692_v61 = vrot.slane %v691_v55, 1  ;;  %v698_v62 = vadd.f32 %v697_v14, %v696_v48  ;;  %v715_v4 = vsel %vm275_vm2, %v533_v15, 0.0 }
  0xf3   :  { %v704_v1 = vrot.slane %v703_v57, 2  ;;  %v812_v2 = vsel %vm344_vm5, %v679_v56, %v811_v16  ;;  %v710_v3 = vadd.f32 %v709_v59, %v708_v52  ;;  %v716_v10 = vrot.slane %v715_v4, 4 }
  0xf4   :  { %v693_v5 = vadd.f32 %v692_v61, %v691_v55  ;;  %v699_v6 = vrot.slane %v698_v62, 1  ;;  %v813_v8 = vsel %vm346_vm6, %v686_v60, %v812_v2  ;;  %v722_v18 = vsel %vm275_vm2, %v534_v17, 0.0 }
  0xf5   :  { %v705_v7 = vadd.f32 %v704_v1, %v703_v57  ;;  %v711_v11 = vrot.slane %v710_v3, 2  ;;  %v729_v20 = vsel %vm275_vm2, %v535_v63, 0.0  ;;  %v717_v13 = vadd.f32 %v716_v10, %v715_v4 }
  0xf6   :  { %v700_v21 = vadd.f32 %v699_v6, %v698_v62  ;;  %v814_v22 = vsel %vm348_vm7, %v693_v5, %v813_v8  ;;  %v723_v19 = vrot.slane %v722_v18, 4  ;;  %v730_v25 = vrot.slane %v729_v20, 4 }
  0xf7   :  { %v706_v23 = vrot.slane %v705_v7, 1  ;;  %v712_v24 = vadd.f32 %v711_v11, %v710_v3  ;;  %v736_v26 = vsel %vm275_vm2, %v536_v9, 0.0  ;;  %v718_v29 = vrot.slane %v717_v13, 2 }
  0xf8   :  { %v815_v27 = vsel %vm350_vm8, %v700_v21, %v814_v22  ;;  %v724_v30 = vadd.f32 %v723_v19, %v722_v18  ;;  %v737_v31 = vrot.slane %v736_v26, 4  ;;  %v731_v35 = vadd.f32 %v730_v25, %v729_v20  ;;  %v1130_v19 = vld [vmem:[#allocation17 + $0x78] sm:$0xff]  ;;  %v1129_v25 = vld [vmem:[#allocation17 + $0x70] sm:$0xff] }
  0xf9   :  { %v707_v33 = vadd.f32 %v706_v23, %v705_v7  ;;  %v713_v34 = vrot.slane %v712_v24, 1  ;;  %v743_v36 = vsel %vm275_vm2, %v537_v12, 0.0  ;;  %v719_v38 = vadd.f32 %v718_v29, %v717_v13  ;;  %v1102_v12 = vld [vmem:[#allocation16 + $0x18] sm:$0xff]  ;;  %v1101_v13 = vld [vmem:[#allocation16 + $0x10] sm:$0xff]  ;;  %v1100_v23 = vld [vmem:[#allocation16 + $0x8] sm:$0xff]  ;;  %2788 = vmatpush3.msra.mxu0 %v1130_v19 }
  0xfa   :  { %v725_v39 = vrot.slane %v724_v30, 2  ;;  %v738_v40 = vadd.f32 %v737_v31, %v736_v26  ;;  %v744_v41 = vrot.slane %v743_v36, 4  ;;  %v732_v44 = vrot.slane %v731_v35, 2  ;;  %2847 = vmatpush3.msra.mxu1 %v1102_v12  ;;  %2789 = vmatprep.subr.mxu0 %v3438_v0  ;;  %v1128_v26 = vld [vmem:[#allocation17 + $0x68] sm:$0xff]  ;;  %v1125_v29 = vld [vmem:[#allocation17 + $0x50] sm:$0xff]  ;;  %v1123_v31 = vld [vmem:[#allocation17 + $0x40] sm:$0xff] }
  0xfb   :  { %v816_v42 = vsel %vm352_vm9, %v707_v33, %v815_v27  ;;  %v714_v43 = vadd.f32 %v713_v34, %v712_v24  ;;  %v750_v45 = vsel %vm275_vm2, %v538_v28, 0.0  ;;  %v720_v46 = vrot.slane %v719_v38, 1  ;;  %2848 = vmatprep.subr.mxu1 %v3438_v0  ;;  %v1099_v24 = vld [vmem:[#allocation16] sm:$0xff]  ;;  %2790 = vmatpush3.msra.mxu0 %v1129_v25  ;;  %v1126_v28 = vld [vmem:[#allocation17 + $0x58] sm:$0xff]  ;;  %v1121_v33 = vld [vmem:[#allocation17 + $0x30] sm:$0xff] }
  0xfc   :  { %2770 = vmatprep.mubr.msk.f32.mxu0 %vm354_vm1, %v816_v42  ;;  %v726_v47 = vadd.f32 %v725_v39, %v724_v30  ;;  %v739_v48 = vrot.slane %v738_v40, 2  ;;  %v745_v49 = vadd.f32 %v744_v41, %v743_v36  ;;  %v733_v50 = vadd.f32 %v732_v44, %v731_v35  ;;  %2849 = vmatpush3.msra.mxu1 %v1101_v13  ;;  %v1127_v27 = vld [vmem:[#allocation17 + $0x60] sm:$0xff]  ;;  %v1124_v30 = vld [vmem:[#allocation17 + $0x48] sm:$0xff]  ;;  %v1118_v42 = vld [vmem:[#allocation17 + $0x18] sm:$0xff] }
  0xfd   :  { %v751_v51 = vrot.slane %v750_v45, 4  ;;  %v757_v52 = vsel %vm275_vm2, %v539_v37, 0.0  ;;  %v721_v53 = vadd.f32 %v720_v46, %v719_v38  ;;  %2850 = vmatprep.subr.mxu1 %v3438_v0  ;;  %2791 = vmatprep.subr.mxu0 %v3438_v0  ;;  %v1120_v34 = vld [vmem:[#allocation17 + $0x28] sm:$0xff]  ;;  %v3806_v35 = vld [vmem:[#allocation8] sm:$0xf]  ;;  %v3089_v13 = vld [vmem:[#allocation11 + $0x18] sm:$0xff] }
  0xfe   :  { %v727_v54 = vrot.slane %v726_v47, 1  ;;  %v740_v55 = vadd.f32 %v739_v48, %v738_v40  ;;  %v746_v14 = vrot.slane %v745_v49, 2  ;;  %v734_v15 = vrot.slane %v733_v50, 1  ;;  %2851 = vmatpush3.msra.mxu1 %v1100_v23  ;;  %2792 = vmatpush3.msra.mxu0 %v1128_v26  ;;  %v3808_v36 = vld [vmem:[#allocation8 + $0x4] sm:$0xf]  ;;  %v1116_v48 = vld [vmem:[#allocation17 + $0x8] sm:$0xff] }
  0xff   :  { %v752_v56 = vadd.f32 %v751_v51, %v750_v45  ;;  %v758_v57 = vrot.slane %v757_v52, 4  ;;  %v817_v61 = vsel %vm340_vm3, %v721_v53, %v714_v43  ;;  %2852 = vmatprep.subr.mxu1 %v3438_v0  ;;  %2793 = vmatprep.subr.mxu0 %v3438_v0  ;;  %v1311_v37 = vsel %vm275_vm2, %v3806_v35, 0.0  ;;  %v1119_v39 = vld [vmem:[#allocation17 + $0x20] sm:$0xff]  ;;  %v1117_v45 = vld [vmem:[#allocation17 + $0x10] sm:$0xff]  ;;  %v1532_v19 = vld [vmem:[#allocation10 + $0xc] sm:$0xf] }
 0x100   :  { %v728_v58 = vadd.f32 %v727_v54, %v726_v47  ;;  %v741_v59 = vrot.slane %v740_v55, 1  ;;  %v747_v60 = vadd.f32 %v746_v14, %v745_v49  ;;  %v735_v62 = vadd.f32 %v734_v15, %v733_v50  ;;  %2853 = vmatpush3.msra.mxu1 %v1099_v24  ;;  %2794 = vmatpush3.msra.mxu0 %v1127_v27  ;;  %v1115_v49 = vld [vmem:[#allocation17] sm:$0xff]  ;;  %v3853_v26 = vld [vmem:[#allocation8 + $0x1c] sm:$0xf] }
 0x101   :  { %v753_v16 = vrot.slane %v752_v56, 2  ;;  %v759_v17 = vadd.f32 %v758_v57, %v757_v52  ;;  %2868 = vmatprep.subr.mxu1 %v3438_v0  ;;  %2795 = vmatprep.subr.mxu0 %v3438_v0  ;;  %v1318_v38 = vsel %vm275_vm2, %v3808_v36, 0.0  ;;  %v1312_v40 = vrot.slane %v1311_v37, 4  ;;  %v3823_v57 = vld [vmem:[#allocation8 + $0x8] sm:$0xf] }
 0x102   :  { %v742_v63 = vadd.f32 %v741_v59, %v740_v55  ;;  %v748_v1 = vrot.slane %v747_v60, 1  ;;  %v818_v2 = vsel %vm342_vm4, %v728_v58, %v817_v61  ;;  %2796 = vmatpush3.msra.mxu0 %v1126_v28  ;;  %v1319_v41 = vrot.slane %v1318_v38, 4  ;;  %v3825_v58 = vld [vmem:[#allocation8 + $0xc] sm:$0xf] }
 0x103   :  { %v754_v3 = vadd.f32 %v753_v16, %v752_v56  ;;  %v760_v4 = vrot.slane %v759_v17, 2  ;;  %v819_v5 = vsel %vm344_vm5, %v735_v62, %v818_v2  ;;  %2797 = vmatprep.subr.mxu0 %v3438_v0  ;;  %v1313_v43 = vadd.f32 %v1312_v40, %v1311_v37  ;;  %v3834_v62 = vld [vmem:[#allocation8 + $0x10] sm:$0xf]  ;;  %v1529_v2 = vld [vmem:[#allocation10] sm:$0xf] }
 0x104   :  { %v749_v6 = vadd.f32 %v748_v1, %v747_v60  ;;  %v820_v8 = vsel %vm346_vm6, %v742_v63, %v819_v5  ;;  %2798 = vmatpush3.msra.mxu0 %v1125_v29  ;;  %v1320_v44 = vadd.f32 %v1319_v41, %v1318_v38  ;;  %v1325_v59 = vsel %vm275_vm2, %v3823_v57, 0.0  ;;  %v3832_v60 = vld [vmem:[%s4180_s10] ss:$0 sm:$0xff]  ;;  %v3839_v5 = vld [vmem:[#allocation8 + $0x14] sm:$0xf]  ;;  %v3091_v38 = vld [vmem:[#allocation11 + $0x8] sm:$0xff] }
 0x105   :  { %v755_v9 = vrot.slane %v754_v3, 1  ;;  %v761_v10 = vadd.f32 %v760_v4, %v759_v17  ;;  %2799 = vmatprep.subr.mxu0 %v3438_v0  ;;  %v1314_v46 = vrot.slane %v1313_v43, 2  ;;  %v1332_v16 = vsel %vm275_vm2, %v3825_v58, 0.0  ;;  %v3090_v29 = vld [vmem:[#allocation11 + $0x10] sm:$0xff] }
 0x106   :  { %v821_v7 = vsel %vm348_vm7, %v749_v6, %v820_v8  ;;  %2800 = vmatpush3.msra.mxu0 %v1124_v30  ;;  %v1321_v47 = vrot.slane %v1320_v44, 2  ;;  %v1326_v63 = vrot.slane %v1325_v59, 4  ;;  %v1333_v6 = vrot.slane %v1332_v16, 4 }
 0x107   :  { %v756_v11 = vadd.f32 %v755_v9, %v754_v3  ;;  %v762_v18 = vrot.slane %v761_v10, 1  ;;  %2801 = vmatprep.subr.mxu0 %v3438_v0  ;;  %v1315_v50 = vadd.f32 %v1314_v46, %v1313_v43  ;;  %v1530_v3 = vld [vmem:[#allocation10 + $0x4] sm:$0xf]  ;;  %v1339_v8 = vsel %vm275_vm2, %v3834_v62, 0.0 }
 0x108   :  { %2802 = vmatpush3.msra.mxu0 %v1123_v31  ;;  %v1322_v51 = vadd.f32 %v1321_v47, %v1320_v44  ;;  %v1334_v12 = vadd.f32 %v1333_v6, %v1332_v16  ;;  %v1582_v37 = vsel %vm275_vm2, %v1532_v19, 0.0  ;;  %v1360_v40 = vsel %vm275_vm2, %v3853_v26, 0.0  ;;  %v1537_v6 = vld [vmem:[#allocation10 + $0x20] sm:$0xf] }
 0x109   :  { %v763_v20 = vadd.f32 %v762_v18, %v761_v10  ;;  %v822_v21 = vsel %vm350_vm8, %v756_v11, %v821_v7  ;;  %2803 = vmatprep.subr.mxu0 %v3438_v0  ;;  %v1316_v52 = vrot.slane %v1315_v50, 1  ;;  %v1327_v10 = vadd.f32 %v1326_v63, %v1325_v59  ;;  %v1531_v7 = vld [vmem:[#allocation10 + $0x8] sm:$0xf] }
 0x10a   :  { %2804 = vmatpush3.msra.mxu0 %v1122_v32  ;;  %v1323_v53 = vrot.slane %v1322_v51, 1  ;;  %v1561_v11 = vsel %vm275_vm2, %v1529_v2, 0.0  ;;  %v1568_v18 = vsel %vm275_vm2, %v1530_v3, 0.0  ;;  %v1575_v25 = vsel %vm275_vm2, %v1531_v7, 0.0 }
 0x10b   :  { %v823_v22 = vsel %vm352_vm9, %v763_v20, %v822_v21  ;;  %2805 = vmatprep.subr.mxu0 %v3438_v0  ;;  %v1317_v54 = vadd.f32 %v1316_v52, %v1315_v50  ;;  %v1340_v20 = vrot.slane %v1339_v8, 4  ;;  %v1346_v21 = vsel %vm275_vm2, %v3839_v5, 0.0 }
 0x10c   :  { %2771 = vmatmul.mubr.msk.f32.gmra.mxu0 %vm354_vm1, %v823_v22  ;;  %v1324_v55 = vadd.f32 %v1323_v53, %v1322_v51  ;;  %v3847_v22 = vld [vmem:[#allocation8 + $0x18] sm:$0xf]  ;;  %v1562_v23 = vrot.slane %v1561_v11, 4  ;;  %v1569_v24 = vrot.slane %v1568_v18, 4  ;;  %v1328_v27 = vrot.slane %v1327_v10, 2 }
 0x10d   :  { %2819 = vmatprep.mubr.msk.f32.mxu0 %vm3439_vm0, %v3438_v0  ;;  %2806 = vmatpush3.msra.mxu0 %v1121_v33  ;;  %v1347_v28 = vrot.slane %v1346_v21, 4  ;;  %v1341_v30 = vadd.f32 %v1340_v20, %v1339_v8  ;;  %v1353_v31 = vsel %vm275_vm2, %v3847_v22, 0.0  ;;  %v1335_v32 = vrot.slane %v1334_v12, 2  ;;  %v1533_v33 = vld [vmem:[#allocation10 + $0x10] sm:$0xf] }
 0x10e   :  { %2807 = vmatprep.subr.mxu0 %v3438_v0  ;;  %v3821_v14 = vsel %vm340_vm3, %v1324_v55, %v1317_v54  ;;  %v1946_v41 = vcombine.low %v3806_v35, %v3808_v36  ;;  %v1563_v43 = vadd.f32 %v1562_v23, %v1561_v11  ;;  %v1570_v44 = vadd.f32 %v1569_v24, %v1568_v18  ;;  %v1535_v20 = vld [vmem:[#allocation10 + $0x18] sm:$0xf] }
 0x10f   :  { %2808 = vmatpush3.msra.mxu0 %v1120_v34  ;;  %v1576_v34 = vrot.slane %v1575_v25, 4  ;;  %v1348_v46 = vadd.f32 %v1347_v28, %v1346_v21  ;;  %v1354_v47 = vrot.slane %v1353_v31, 4  ;;  %v1583_v50 = vrot.slane %v1582_v37, 4 }
 0x110   :  { %2809 = vmatprep.subr.mxu0 %v3438_v0  ;;  %v1589_v51 = vsel %vm275_vm2, %v1533_v33, 0.0  ;;  %v1336_v52 = vadd.f32 %v1335_v32, %v1334_v12  ;;  %v1361_v53 = vrot.slane %v1360_v40, 4  ;;  %v1564_v54 = vrot.slane %v1563_v43, 2  ;;  %v1538_v12 = vld [vmem:[#allocation10 + $0x24] sm:$0xf] }
 0x111   :  { %2810 = vmatpush3.msra.mxu0 %v1119_v39  ;;  %v1302_v39 = vld [vmem:[#allocation7] sm:$0xff]  ;;  %v1577_v35 = vadd.f32 %v1576_v34, %v1575_v25  ;;  %v1571_v55 = vrot.slane %v1570_v44, 2  ;;  %v1355_v59 = vadd.f32 %v1354_v47, %v1353_v31  ;;  %v1947_v3 = vcombine.low %v3823_v57, %v3825_v58 }
 0x112   :  { %2811 = vmatprep.subr.mxu0 %v3438_v0  ;;  %v1362_v2 = vadd.f32 %v1361_v53, %v1360_v40  ;;  %v1565_v8 = vadd.f32 %v1564_v54, %v1563_v43  ;;  %v1617_v57 = vsel %vm275_vm2, %v1537_v6, 0.0  ;;  %v1603_v28 = vsel %vm275_vm2, %v1535_v20, 0.0 }
 0x113   :  { %2812 = vmatpush3.msra.mxu0 %v1118_v42  ;;  %v1534_v42 = vld [vmem:[#allocation10 + $0x14] sm:$0xf]  ;;  %v1356_v18 = vrot.slane %v1355_v59, 2  ;;  %v1618_v34 = vrot.slane %v1617_v57, 4  ;;  %vm1042_vm10 = vcmask 1043456  }
 0x114   :  { %2813 = vmatprep.subr.mxu0 %v3438_v0  ;;  %v1596_v36 = vsel %vm275_vm2, %v1534_v42, 0.0  ;;  %v1363_v24 = vrot.slane %v1362_v2, 2  ;;  %v1540_v42 = vld [vmem:[#allocation10 + $0x2c] sm:$0xf] }
 0x115   :  { %2814 = vmatpush3.msra.mxu0 %v1117_v45  ;;  %v1329_v45 = vadd.f32 %v1328_v27, %v1327_v10  ;;  %v1597_v63 = vrot.slane %v1596_v36, 4  ;;  %v1948_v10 = vcombine.low %v3834_v62, %v3839_v5  ;;  %v1949_v62 = vcombine.low %v3847_v22, %v3853_v26  ;;  %v1536_v22 = vld [vmem:[#allocation10 + $0x1c] sm:$0xf] }
 0x116   :  { %2815 = vmatprep.subr.mxu0 %v3438_v0  ;;  %v1566_v5 = vrot.slane %v1565_v8, 1  ;;  %v1357_v31 = vadd.f32 %v1356_v18, %v1355_v59  ;;  %v1638_v54 = vsel %vm275_vm2, %v1540_v42, 0.0 }
 0x117   :  { %2816 = vmatpush3.msra.mxu0 %v1116_v48  ;;  %v3092_v48 = vld [vmem:[#allocation11] sm:$0xff]  ;;  %v1598_v23 = vadd.f32 %v1597_v63, %v1596_v36 }
 0x118   :  { %2817 = vmatprep.subr.mxu0 %v3438_v0  ;;  %v1567_v47 = vadd.f32 %v1566_v5, %v1565_v8  ;;  %v1639_v8 = vrot.slane %v1638_v54, 4 }
 0x119   :  { %2818 = vmatpush3.msra.mxu0 %v1115_v49  ;;  %v1342_v49 = vrot.slane %v1341_v30, 2 }
 0x11a   :  { %2857 = vmatprep.subr.mxu0 %v3438_v0  ;;  %v1640_v5 = vadd.f32 %v1639_v8, %v1638_v54 }
 0x11b   :  { %v1343_v16 = vadd.f32 %v1342_v49, %v1341_v30  ;;  %v1624_v30 = vsel %vm275_vm2, %v1538_v12, 0.0  ;;  %v1358_v49 = vrot.slane %v1357_v31, 1 }
 0x11c   :  { %v1625_v43 = vrot.slane %v1624_v30, 4 }
 0x11e   :  { %v1626_v59 = vadd.f32 %v1625_v43, %v1624_v30 }
 0x179   :  { %v496_v15 = vpop.f32.mrf.mxu1 }
 0x17b   :  { %v2758_v56 = vpop.f32.mrf.mxu1 }
 0x17c   :  { %v1349_v56 = vrot.slane %v1348_v46, 2 }
 0x17e   :  { %v1350_v11 = vadd.f32 %v1349_v56, %v1348_v46 }
 0x18a   :  { %v423_v61 = vpop.f32.mrf.mxu0 }
 0x18b   :  { %v497_v17 = vadd.f32 %v496_v15, %v423_v61  ;;  %v1330_v15 = vrot.slane %v1329_v45, 1  ;;  %v1590_v61 = vrot.slane %v1589_v51, 4 }
 0x18c   :  { %v2747_v1 = vpop.f32.mrf.mxu0 }
 0x18d   :  { %v506_v4 = vadd.f32 %v3832_v60, %v497_v17  ;;  %v1584_v17 = vadd.f32 %v1583_v50, %v1582_v37  ;;  %v1337_v1 = vrot.slane %v1336_v52, 1  ;;  %v1331_v7 = vadd.f32 %v1330_v15, %v1329_v45 }
 0x18e   :  { %v1591_v21 = vadd.f32 %v1590_v61, %v1589_v51  ;;  %v1364_v45 = vadd.f32 %v1363_v24, %v1362_v2  ;;  %v1610_v51 = vsel %vm275_vm2, %v1536_v22, 0.0  ;;  %v1543_v22 = vld [vmem:[#allocation10 + $0x38] sm:$0xf] }
 0x18f   :  { %v507_v9 = vmax.f32 %v506_v4, 0.0  ;;  %v1578_v4 = vrot.slane %v1577_v35, 2  ;;  %v1585_v19 = vrot.slane %v1584_v17, 2  ;;  %v1338_v58 = vadd.f32 %v1337_v1, %v1336_v52 }
 0x190   :  { %v1376_v32 = vsel %vm342_vm4, %v1331_v7, %v3821_v14  ;;  %v1592_v33 = vrot.slane %v1591_v21, 2  ;;  %v1619_v52 = vadd.f32 %v1618_v34, %v1617_v57  ;;  %v1611_v63 = vrot.slane %v1610_v51, 4  ;;  %v1542_v7 = vld [vmem:[#allocation10 + $0x34] sm:$0xf] }
 0x191   :  { %2855 = vmatmul.mubr.f32.vlgmr.msra.gmra.mxu1 %v507_v9  ;;  %v1572_v9 = vadd.f32 %v1571_v55, %v1570_v44  ;;  %v1579_v25 = vadd.f32 %v1578_v4, %v1577_v35  ;;  %v1586_v26 = vadd.f32 %v1585_v19, %v1584_v17  ;;  %v1377_v46 = vsel %vm344_vm5, %v1338_v58, %v1376_v32  ;;  %v2783_v55 = vpop.f32.mrf.mxu1 }
 0x192   :  { %2869 = vmatpush3.msra.mxu1 %v3089_v13  ;;  %2876 = vmatprep.mubr.msk.f32.mxu1 %vm3439_vm0, %v3438_v0  ;;  %v1593_v50 = vadd.f32 %v1592_v33, %v1591_v21  ;;  %v1365_v17 = vrot.slane %v1364_v45, 1  ;;  %v1620_v6 = vrot.slane %v1619_v52, 2  ;;  %v1612_v24 = vadd.f32 %v1611_v63, %v1610_v51  ;;  %v1546_v33 = vld [vmem:[#allocation10 + $0x44] sm:$0xf] }
 0x193   :  { %2870 = vmatprep.subr.mxu1 %v3438_v0  ;;  %v1573_v27 = vrot.slane %v1572_v9, 1  ;;  %v1580_v40 = vrot.slane %v1579_v25, 1  ;;  %v1587_v53 = vrot.slane %v1586_v26, 1  ;;  %v1003_v21 = vpop.f32.mrf.mxu1 }
 0x194   :  { %2871 = vmatpush3.msra.mxu1 %v3090_v29  ;;  %v1594_v4 = vrot.slane %v1593_v50, 1 }
 0x195   :  { %2872 = vmatprep.subr.mxu1 %v3438_v0  ;;  %v1574_v14 = vadd.f32 %v1573_v27, %v1572_v9  ;;  %v1581_v15 = vadd.f32 %v1580_v40, %v1579_v25  ;;  %v1359_v9 = vadd.f32 %v1358_v49, %v1357_v31  ;;  %v1652_v27 = vsel %vm275_vm2, %v1542_v7, 0.0 }
 0x196   :  { %2873 = vmatpush3.msra.mxu1 %v3091_v38  ;;  %v1595_v25 = vadd.f32 %v1594_v4, %v1593_v50  ;;  %v1653_v42 = vrot.slane %v1652_v27, 4  ;;  %v1659_v49 = vsel %vm275_vm2, %v1543_v22, 0.0 }
 0x197   :  { %2874 = vmatprep.subr.mxu1 %v3438_v0  ;;  %v1817_v1 = vsel %vm340_vm3, %v1574_v14, %v1567_v47  ;;  %v1680_v47 = vsel %vm275_vm2, %v1546_v33, 0.0  ;;  %v1660_v63 = vrot.slane %v1659_v49, 4  ;;  %v1550_v33 = vld [vmem:[#allocation10 + $0x54] sm:$0xf] }
 0x198   :  { %2875 = vmatpush3.msra.mxu1 %v3092_v48 }
 0x199   :  { %2893 = vmatprep.subr.mxu1 %v3089_v13  ;;  %2877 = vmatmul.mubr.msk.f32.vlgmr.msra.gmra.mxu1 %vm354_vm1, %v1302_v39  ;;  %v1599_v39 = vrot.slane %v1598_v23, 2 }
 0x19a   :  { %2894 = vmatpush3.msra.mxu1 %v3089_v13  ;;  %2901 = vmatprep.mubr.msk.f32.mxu1 %vm354_vm1, %v1946_v41  ;;  %v1344_v13 = vrot.slane %v1343_v16, 1  ;;  %v1604_v41 = vrot.slane %v1603_v28, 4 }
 0x19b   :  { %2895 = vmatprep.subr.mxu1 %v3090_v29  ;;  %v1600_v35 = vadd.f32 %v1599_v39, %v1598_v23  ;;  %v1627_v23 = vrot.slane %v1626_v59, 2  ;;  %v1547_v39 = vld [vmem:[#allocation10 + $0x48] sm:$0xf] }
 0x19c   :  { %2896 = vmatpush3.msra.mxu1 %v3090_v29  ;;  %v1539_v29 = vld [vmem:[#allocation10 + $0x28] sm:$0xf]  ;;  %v1345_v37 = vadd.f32 %v1344_v13, %v1343_v16  ;;  %v1605_v56 = vadd.f32 %v1604_v41, %v1603_v28  ;;  %v1545_v28 = vld [vmem:[#allocation10 + $0x40] sm:$0xf]  ;;  %v1613_v41 = vrot.slane %v1612_v24, 2  ;;  %v1687_v50 = vsel %vm275_vm2, %v1547_v39, 0.0 }
 0x19d   :  { %2897 = vmatprep.subr.mxu1 %v3091_v38  ;;  %v1631_v44 = vsel %vm275_vm2, %v1539_v29, 0.0  ;;  %v1601_v13 = vrot.slane %v1600_v35, 1  ;;  %v3895_v29 = vadd.f32 %v1365_v17, %v1364_v45  ;;  %v1673_v43 = vsel %vm275_vm2, %v1545_v28, 0.0  ;;  %v1551_v39 = vld [vmem:[#allocation10 + $0x58] sm:$0xf] }
 0x19e   :  { %2898 = vmatpush3.msra.mxu1 %v3091_v38  ;;  %v1351_v38 = vrot.slane %v1350_v11, 1  ;;  %v1632_v36 = vrot.slane %v1631_v44, 4  ;;  %v1606_v19 = vrot.slane %v1605_v56, 2 }
 0x19f   :  { %2899 = vmatprep.subr.mxu1 %v3092_v48 }
 0x1a0   :  { %2900 = vmatpush3.msra.mxu1 %v3092_v48  ;;  %v1541_v48 = vld [vmem:[#allocation10 + $0x30] sm:$0xf]  ;;  %v1352_v16 = vadd.f32 %v1351_v38, %v1350_v11  ;;  %v1633_v18 = vadd.f32 %v1632_v36, %v1631_v44  ;;  %v1818_v11 = vsel %vm342_vm4, %v1581_v15, %v1817_v1  ;;  %v1607_v38 = vadd.f32 %v1606_v19, %v1605_v56 }
 0x1a1   :  { %2902 = vmatmul.mubr.msk.f32.vlgmr.msra.gmra.mxu1 %vm354_vm1, %v1947_v3  ;;  %2942 = vmatprep.subr.mxu1 %v3438_v0  ;;  %v1645_v61 = vsel %vm275_vm2, %v1541_v48, 0.0  ;;  %v1378_v3 = vsel %vm346_vm6, %v1345_v37, %v1377_v46  ;;  %v1602_v37 = vadd.f32 %v1601_v13, %v1600_v35  ;;  %v1641_v46 = vrot.slane %v1640_v5, 2 }
 0x1a2   :  { %2904 = vmatprep.mubr.msk.f32.mxu1 %vm354_vm1, %v1948_v10  ;;  %v1588_v10 = vadd.f32 %v1587_v53, %v1586_v26  ;;  %v1646_v20 = vrot.slane %v1645_v61, 4  ;;  %v1379_v58 = vsel %vm348_vm7, %v1352_v16, %v1378_v3  ;;  %v1634_v31 = vrot.slane %v1633_v18, 2  ;;  %v1544_v53 = vld [vmem:[#allocation10 + $0x3c] sm:$0xf] }
 0x1a3   :  { %v3899_v34 = vsel %vm350_vm8, %v1359_v9, %v1379_v58  ;;  %v1628_v26 = vadd.f32 %v1627_v23, %v1626_v59  ;;  %v1674_v36 = vrot.slane %v1673_v43, 4  ;;  %v1614_v15 = vadd.f32 %v1613_v41, %v1612_v24  ;;  %v1548_v59 = vld [vmem:[#allocation10 + $0x4c] sm:$0xf]  ;;  %v1553_v41 = vld [vmem:[#allocation10 + $0x60] sm:$0xf] }
 0x1a4   :  { %v1819_v30 = vsel %vm344_vm5, %v1588_v10, %v1818_v11  ;;  %v1647_v32 = vadd.f32 %v1646_v20, %v1645_v61  ;;  %v1635_v14 = vadd.f32 %v1634_v31, %v1633_v18  ;;  %v1654_v56 = vadd.f32 %v1653_v42, %v1652_v27 }
 0x1a5   :  { %2905 = vmatmul.mubr.msk.f32.gmra.mxu1 %vm354_vm1, %v1949_v62  ;;  %v1621_v62 = vadd.f32 %v1620_v6, %v1619_v52  ;;  %v1820_v44 = vsel %vm346_vm6, %v1595_v25, %v1819_v30  ;;  %v1608_v52 = vrot.slane %v1607_v38, 1  ;;  %v1629_v35 = vrot.slane %v1628_v26, 1 }
 0x1a6   :  { %2974 = vmatprep.mubr.msk.f32.mxu1 %vm3439_vm0, %v3438_v0  ;;  %v1648_v48 = vrot.slane %v1647_v32, 2  ;;  %v1681_v61 = vrot.slane %v1680_v47, 4  ;;  %v3908_v16 = vsel %vm348_vm7, %v1602_v37, %v1820_v44  ;;  %v1642_v17 = vadd.f32 %v1641_v46, %v1640_v5  ;;  %v1554_v46 = vld [vmem:[#allocation10 + $0x64] sm:$0xf] }
 0x1a7   :  { %v1622_v45 = vrot.slane %v1621_v62, 1  ;;  %v1688_v1 = vrot.slane %v1687_v50, 4  ;;  %v1636_v4 = vrot.slane %v1635_v14, 1  ;;  %v1630_v8 = vadd.f32 %v1629_v35, %v1628_v26 }
 0x1a8   :  { %v1649_v6 = vadd.f32 %v1648_v48, %v1647_v32  ;;  %v1675_v9 = vadd.f32 %v1674_v36, %v1673_v43  ;;  %v1694_v10 = vsel %vm275_vm2, %v1548_v59, 0.0  ;;  %v1615_v18 = vrot.slane %v1614_v15, 1 }
 0x1a9   :  { %v1623_v3 = vadd.f32 %v1622_v45, %v1621_v62  ;;  %v1655_v20 = vrot.slane %v1654_v56, 2  ;;  %v1643_v13 = vrot.slane %v1642_v17, 1  ;;  %v1661_v19 = vadd.f32 %v1660_v63, %v1659_v49 }
 0x1aa   :  { %v1689_v23 = vadd.f32 %v1688_v1, %v1687_v50  ;;  %v1637_v58 = vadd.f32 %v1636_v4, %v1635_v14  ;;  %v1650_v24 = vrot.slane %v1649_v6, 1  ;;  %v1695_v25 = vrot.slane %v1694_v10, 4 }
 0x1ab   :  { %v2769_v2 = vpop.f32.mrf.mxu0  ;;  %v1824_v5 = vsel %vm340_vm3, %v1630_v8, %v1623_v3  ;;  %v1676_v27 = vrot.slane %v1675_v9, 2  ;;  %v3918_v31 = vadd.f32 %v1615_v18, %v1614_v15  ;;  %v3920_v32 = vadd.f32 %v1655_v20, %v1654_v56 }
 0x1ac   :  { %v1009_v51 = vadd.f32 %v2783_v55, %v2769_v2  ;;  %v1666_v55 = vsel %vm275_vm2, %v1544_v53, 0.0  ;;  %v3922_v22 = vadd.f32 %v1643_v13, %v1642_v17  ;;  %v3928_v43 = vsel %vm342_vm4, %v1637_v58, %v1824_v5 }
 0x1ad   :  { %v898_v12 = vpop.f32.mrf.mxu0  ;;  %v1667_v11 = vrot.slane %v1666_v55, 4  ;;  %v1696_v44 = vadd.f32 %v1695_v25, %v1694_v10  ;;  %v3930_v48 = vadd.f32 %v1650_v24, %v1649_v6  ;;  %v1677_v49 = vadd.f32 %v1676_v27, %v1675_v9  ;;  %v1555_v9 = vld [vmem:[#allocation10 + $0x68] sm:$0xf]  ;;  %v2786_v27 = vpop.f32.mrf.mxu1 }
 0x1ae   :  { %v1004_v57 = vadd.f32 %v1003_v21, %v898_v12  ;;  %v1023_v2 = vadd.f32 %v3832_v60, %v1009_v51  ;;  %v1549_v21 = vld [vmem:[#allocation10 + $0x50] sm:$0xf]  ;;  %v1682_v12 = vadd.f32 %v1681_v61, %v1680_v47  ;;  %v1708_v51 = vsel %vm275_vm2, %v1550_v33, 0.0  ;;  %v1552_v61 = vld [vmem:[#allocation10 + $0x5c] sm:$0xf] }
 0x1af   :  { %v1701_v28 = vsel %vm275_vm2, %v1549_v21, 0.0  ;;  %v3924_v26 = vadd.f32 %v1667_v11, %v1666_v55  ;;  %v1729_v53 = vsel %vm275_vm2, %v1553_v41, 0.0  ;;  %v1736_v15 = vsel %vm275_vm2, %v1554_v46, 0.0 }
 0x1b0   :  { %v1022_v40 = vadd.f32 %v3832_v60, %v1004_v57  ;;  %v3913_v57 = vadd.f32 %v1608_v52, %v1607_v38  ;;  %v1027_v62 = vmax.f32 %v1023_v2, 0.0  ;;  %v1683_v37 = vrot.slane %v1682_v12, 2 }
 0x1b1   :  { %v1662_v38 = vrot.slane %v1661_v19, 2  ;;  %v1702_v45 = vrot.slane %v1701_v28, 4  ;;  %v1715_v52 = vsel %vm275_vm2, %v1551_v39, 0.0  ;;  %v1657_v56 = vrot.slane %v3920_v32, 1 }
 0x1b2   :  { %v1026_v54 = vmax.f32 %v1022_v40, 0.0  ;;  %v1690_v40 = vrot.slane %v1689_v23, 2  ;;  %v1035_v47 = vcombine.high %v1027_v62, %v1027_v62  ;;  %v1684_v50 = vadd.f32 %v1683_v37, %v1682_v12 }
 0x1b3   :  { %v1057_v35 = vsel %vm1042_vm10, %v1027_v62, 0.0  ;;  %v1669_v59 = vrot.slane %v3924_v26, 2  ;;  %v1697_v17 = vrot.slane %v1696_v44, 2  ;;  %v1703_v63 = vadd.f32 %v1702_v45, %v1701_v28  ;;  %v1556_v45 = vld [vmem:[#allocation10 + $0x6c] sm:$0xf] }
 0x1b4   :  { %v1034_v7 = vcombine.high %v1026_v54, %v1026_v54  ;;  %v1043_v42 = vsel %vm1042_vm10, %v1026_v54, 0.0  ;;  %v1691_v54 = vadd.f32 %v1690_v40, %v1689_v23  ;;  %v1064_v1 = vsel %vm1042_vm10, %v1035_v47, 0.0 }
 0x1b5   :  { %v1044_v36 = vrot.slane %v1043_v42, 4  ;;  %v1709_v4 = vrot.slane %v1708_v51, 4  ;;  %v1730_v6 = vrot.slane %v1729_v53, 4  ;;  %v1058_v55 = vrot.slane %v1057_v35, 4 }
 0x1b6   :  { %v1050_v30 = vsel %vm1042_vm10, %v1034_v7, 0.0  ;;  %v1678_v2 = vrot.slane %v1677_v49, 1  ;;  %v1716_v8 = vrot.slane %v1715_v52, 4  ;;  %v1737_v10 = vrot.slane %v1736_v15, 4 }
 0x1b7   :  { %v1051_v14 = vrot.slane %v1050_v30, 4  ;;  %v1045_v7 = vadd.f32 %v1044_v36, %v1043_v42  ;;  %v1685_v18 = vrot.slane %v1684_v50, 1  ;;  %v1692_v20 = vrot.slane %v1691_v54, 1 }
 0x1b8   :  { %v1722_v21 = vsel %vm275_vm2, %v1552_v61, 0.0  ;;  %v1065_v12 = vrot.slane %v1064_v1, 4  ;;  %v3941_v13 = vadd.f32 %v1662_v38, %v1661_v19  ;;  %v1698_v11 = vadd.f32 %v1697_v17, %v1696_v44 }
 0x1b9   :  { %v1052_v3 = vadd.f32 %v1051_v14, %v1050_v30  ;;  %v1704_v23 = vrot.slane %v1703_v63, 2  ;;  %v3943_v24 = vadd.f32 %v1709_v4, %v1708_v51  ;;  %v1731_v25 = vadd.f32 %v1730_v6, %v1729_v53 }
 0x1ba   :  { %v1743_v62 = vsel %vm275_vm2, %v1555_v9, 0.0  ;;  %v1059_v5 = vadd.f32 %v1058_v55, %v1057_v35  ;;  %v3946_v28 = vadd.f32 %v1716_v8, %v1715_v52  ;;  %v1723_v30 = vrot.slane %v1722_v21, 4  ;;  %v1013_v35 = vpop.f32.mrf.mxu1 }
 0x1bb   :  { %v1053_v58 = vrot.slane %v1052_v3, 2  ;;  %v1738_v33 = vadd.f32 %v1737_v10, %v1736_v15  ;;  %v1046_v37 = vrot.slane %v1045_v7, 2  ;;  %v1679_v39 = vadd.f32 %v1678_v2, %v1677_v49  ;;  %v1558_v10 = vld [vmem:[#allocation10 + $0x74] sm:$0xf] }
 0x1bc   :  { %v1686_v40 = vadd.f32 %v1685_v18, %v1684_v50  ;;  %v3948_v41 = vadd.f32 %v1692_v20, %v1691_v54  ;;  %v1066_v19 = vadd.f32 %v1065_v12, %v1064_v1  ;;  %v1699_v42 = vrot.slane %v1698_v11, 1 }
 0x1bd   :  { %v3950_v44 = vadd.f32 %v1704_v23, %v1703_v63  ;;  %v1744_v46 = vrot.slane %v1743_v62, 4  ;;  %v1054_v47 = vadd.f32 %v1053_v58, %v1052_v3  ;;  %v1711_v51 = vrot.slane %v3943_v24, 2  ;;  %v1557_v63 = vld [vmem:[#allocation10 + $0x70] sm:$0xf] }
 0x1be   :  { %v1732_v52 = vrot.slane %v1731_v25, 2  ;;  %v1060_v53 = vrot.slane %v1059_v5, 2  ;;  %v1718_v49 = vrot.slane %v3946_v28, 2  ;;  %v3954_v50 = vadd.f32 %v1723_v30, %v1722_v21  ;;  %v2133_v30 = vld [vmem:[#allocation19 + $0x70] sm:$0xff] }
 0x1bf   :  { %v1739_v54 = vrot.slane %v1738_v33, 2  ;;  %v1047_v15 = vadd.f32 %v1046_v37, %v1045_v7  ;;  %v1750_v1 = vsel %vm275_vm2, %v1556_v45, 0.0  ;;  %v1067_v3 = vrot.slane %v1066_v19, 2 }
 0x1c0   :  { %v3958_v4 = vadd.f32 %v1699_v42, %v1698_v11  ;;  %v3961_v6 = vsel %vm340_vm3, %v1686_v40, %v1679_v39  ;;  %v3963_v55 = vadd.f32 %v1744_v46, %v1743_v62  ;;  %v1055_v2 = vrot.slane %v1054_v47, 1  ;;  %v2134_v62 = vld [vmem:[#allocation19 + $0x78] sm:$0xff]  ;;  %v2132_v42 = vld [vmem:[#allocation19 + $0x68] sm:$0xff] }
 0x1c1   :  { %v3966_v7 = vadd.f32 %v1732_v52, %v1731_v25  ;;  %v1061_v18 = vadd.f32 %v1060_v53, %v1059_v5  ;;  %v3968_v20 = vadd.f32 %v1739_v54, %v1738_v33  ;;  %v1751_v21 = vrot.slane %v1750_v1, 4  ;;  %2943 = vmatpush3.msra.mxu1 %v2134_v62 }
 0x1c2   :  { %v1757_v12 = vsel %vm275_vm2, %v1557_v63, 0.0  ;;  %v1048_v11 = vrot.slane %v1047_v15, 1  ;;  %v1068_v37 = vadd.f32 %v1067_v3, %v1066_v19  ;;  %v1764_v25 = vsel %vm275_vm2, %v1558_v10, 0.0  ;;  %2944 = vmatprep.subr.mxu1 %v3438_v0  ;;  %v1559_v19 = vld [vmem:[#allocation10 + $0x78] sm:$0xf] }
 0x1c3   :  { %v1056_v5 = vadd.f32 %v1055_v2, %v1054_v47  ;;  %v1062_v45 = vrot.slane %v1061_v18, 1  ;;  %2945 = vmatpush3.msra.mxu1 %v2133_v30  ;;  %v1758_v54 = vrot.slane %v1757_v12, 4  ;;  %v2131_v47 = vld [vmem:[#allocation19 + $0x60] sm:$0xff]  ;;  %v1771_v10 = vsel %vm275_vm2, %v1559_v19, 0.0 }
 0x1c4   :  { %v1049_v53 = vadd.f32 %v1048_v11, %v1047_v15  ;;  %2946 = vmatprep.subr.mxu1 %v3438_v0  ;;  %v1069_v2 = vrot.slane %v1068_v37, 1  ;;  %v2130_v15 = vld [vmem:[#allocation19 + $0x58] sm:$0xff]  ;;  %v1734_v62 = vrot.slane %v3966_v7, 1 }
 0x1c5   :  { %2947 = vmatpush3.msra.mxu1 %v2132_v42  ;;  %v1063_v11 = vadd.f32 %v1062_v45, %v1061_v18 }
 0x1c6   :  { %2948 = vmatprep.subr.mxu1 %v3438_v0  ;;  %v1070_v18 = vadd.f32 %v1069_v2, %v1068_v37  ;;  %v1706_v2 = vrot.slane %v3950_v44, 1 }
 0x1c7   :  { %2949 = vmatpush3.msra.mxu1 %v2131_v47 }
 0x1c8   :  { %2950 = vmatprep.subr.mxu1 %v3438_v0 }
 0x1c9   :  { %2951 = vmatpush3.msra.mxu1 %v2130_v15 }
 0x1ca   :  { %2952 = vmatprep.subr.mxu1 %v3438_v0 }
 0x1cc   :  { %v2772_v38 = vpop.f32.mrf.mxu0 }
 0x1cd   :  { %v1019_v14 = vadd.f32 %v2786_v27, %v2772_v38 }
 0x1ce   :  { %v908_v36 = vpop.f32.mrf.mxu0 }
 0x1cf   :  { %v1025_v61 = vadd.f32 %v3832_v60, %v1019_v14  ;;  %v1014_v17 = vadd.f32 %v1013_v35, %v908_v36  ;;  %v1752_v36 = vadd.f32 %v1751_v21, %v1750_v1 }
 0x1d1   :  { %v1029_v8 = vmax.f32 %v1025_v61, 0.0  ;;  %v1024_v9 = vadd.f32 %v3832_v60, %v1014_v17  ;;  %v1746_v60 = vrot.slane %v3963_v55, 2  ;;  %v1753_v30 = vrot.slane %v1752_v36, 2 }
 0x1d3   :  { %v1037_v23 = vcombine.high %v1029_v8, %v1029_v8  ;;  %v1085_v58 = vsel %vm1042_vm10, %v1029_v8, 0.0  ;;  %v1028_v27 = vmax.f32 %v1024_v9, 0.0  ;;  %v1139_v8 = vsel %vm340_vm3, %v1056_v5, %v1049_v53  ;;  %v2129_v5 = vld [vmem:[#allocation19 + $0x50] sm:$0xff] }
 0x1d4   :  { %v1086_v39 = vrot.slane %v1085_v58, 4  ;;  %v1765_v9 = vrot.slane %v1764_v25, 4  ;;  %v1747_v45 = vadd.f32 %v1746_v60, %v3963_v55  ;;  %v1741_v53 = vrot.slane %v3968_v20, 1  ;;  %2953 = vmatpush3.msra.mxu1 %v2129_v5  ;;  %v2127_v55 = vld [vmem:[#allocation19 + $0x40] sm:$0xff] }
 0x1d5   :  { %v1092_v33 = vsel %vm1042_vm10, %v1037_v23, 0.0  ;;  %v1036_v40 = vcombine.high %v1028_v27, %v1028_v27  ;;  %v1071_v38 = vsel %vm1042_vm10, %v1028_v27, 0.0  ;;  %2954 = vmatprep.subr.mxu1 %v3438_v0 }
 0x1d6   :  { %v1087_v46 = vadd.f32 %v1086_v39, %v1085_v58  ;;  %v1093_v14 = vrot.slane %v1092_v33, 4  ;;  %v1072_v52 = vrot.slane %v1071_v38, 4  ;;  %v1560_v58 = vld [vmem:[#allocation10 + $0x7c] sm:$0xf]  ;;  %v1759_v39 = vadd.f32 %v1758_v54, %v1757_v12 }
 0x1d7   :  { %v1078_v35 = vsel %vm1042_vm10, %v1036_v40, 0.0  ;;  %v1748_v15 = vrot.slane %v1747_v45, 1 }
 0x1d8   :  { %v1088_v61 = vrot.slane %v1087_v46, 2  ;;  %v1094_v17 = vadd.f32 %v1093_v14, %v1092_v33  ;;  %v1073_v63 = vadd.f32 %v1072_v52, %v1071_v38  ;;  %v1079_v3 = vrot.slane %v1078_v35, 4 }
 0x1d9   :  { %v1140_v33 = vsel %vm342_vm4, %v1063_v11, %v1139_v8  ;;  %v1772_v14 = vrot.slane %v1771_v10, 4  ;;  %v1778_v52 = vsel %vm275_vm2, %v1560_v58, 0.0  ;;  %v1735_v8 = vadd.f32 %v1734_v62, %v3966_v7 }
 0x1da   :  { %v1095_v1 = vrot.slane %v1094_v17, 2  ;;  %v1074_v21 = vrot.slane %v1073_v63, 2  ;;  %v1080_v23 = vadd.f32 %v1079_v3, %v1078_v35  ;;  %v1089_v27 = vadd.f32 %v1088_v61, %v1087_v46  ;;  %v2128_v46 = vld [vmem:[#allocation19 + $0x48] sm:$0xff] }
 0x1db   :  { %v1766_v35 = vadd.f32 %v1765_v9, %v1764_v25  ;;  %v1141_v47 = vsel %vm344_vm5, %v1070_v18, %v1140_v33  ;;  %v1754_v61 = vadd.f32 %v1753_v30, %v1752_v36  ;;  %v1779_v3 = vrot.slane %v1778_v52, 4  ;;  %2955 = vmatpush3.msra.mxu1 %v2128_v46  ;;  %v2126_v9 = vld [vmem:[#allocation19 + $0x38] sm:$0xff] }
 0x1dc   :  { %v1096_v40 = vadd.f32 %v1095_v1, %v1094_v17  ;;  %v1075_v38 = vadd.f32 %v1074_v21, %v1073_v63  ;;  %v1081_v42 = vrot.slane %v1080_v23, 2  ;;  %v1090_v54 = vrot.slane %v1089_v27, 1  ;;  %2956 = vmatprep.subr.mxu1 %v3438_v0 }
 0x1dd   :  { %v1760_v17 = vrot.slane %v1759_v39, 2  ;;  %v1773_v25 = vadd.f32 %v1772_v14, %v1771_v10  ;;  %v1742_v1 = vadd.f32 %v1741_v53, %v3968_v20  ;;  %v1767_v21 = vrot.slane %v1766_v35, 2  ;;  %2957 = vmatpush3.msra.mxu1 %v2127_v55  ;;  %v3093_v14 = vld [vmem:[#allocation13 + $0x18] sm:$0xff] }
 0x1de   :  { %v1076_v19 = vrot.slane %v1075_v38, 1  ;;  %v1082_v12 = vadd.f32 %v1081_v42, %v1080_v23  ;;  %v1097_v37 = vrot.slane %v1096_v40, 1  ;;  %v1091_v23 = vadd.f32 %v1090_v54, %v1089_v27  ;;  %2958 = vmatprep.subr.mxu1 %v3438_v0 }
 0x1df   :  { %v1712_v58 = vadd.f32 %v1711_v51, %v3943_v24  ;;  %v1832_v7 = vsel %vm342_vm4, %v3948_v41, %v3961_v6  ;;  %v1761_v10 = vadd.f32 %v1760_v17, %v1759_v39  ;;  %v1755_v5 = vrot.slane %v1754_v61, 1  ;;  %2959 = vmatpush3.msra.mxu1 %v2126_v9 }
 0x1e0   :  { %v1077_v60 = vadd.f32 %v1076_v19, %v1075_v38  ;;  %v1083_v63 = vrot.slane %v1082_v12, 1  ;;  %v1098_v62 = vadd.f32 %v1097_v37, %v1096_v40  ;;  %v1780_v33 = vadd.f32 %v1779_v3, %v1778_v52  ;;  %2960 = vmatprep.subr.mxu1 %v3438_v0  ;;  %v3094_v19 = vld [vmem:[#allocation13 + $0x10] sm:$0xff]  ;;  %v3097_v3 = vld [vmem:[#allocation14 + $0x18] sm:$0xff] }
 0x1e1   :  { %v1725_v27 = vrot.slane %v3954_v50, 2  ;;  %v1749_v38 = vadd.f32 %v1748_v15, %v1747_v45  ;;  %v1774_v42 = vrot.slane %v1773_v25, 2  ;;  %v1719_v41 = vadd.f32 %v1718_v49, %v3946_v28  ;;  %v3098_v15 = vld [vmem:[#allocation14 + $0x10] sm:$0xff] }
 0x1e2   :  { %v1084_v11 = vadd.f32 %v1083_v63, %v1082_v12  ;;  %v1142_v36 = vsel %vm346_vm6, %v1077_v60, %v1141_v47  ;;  %v1768_v51 = vadd.f32 %v1767_v21, %v1766_v35  ;;  %v1838_v6 = vsel %vm340_vm3, %v1742_v1, %v1735_v8  ;;  %v3099_v21 = vld [vmem:[#allocation14 + $0x8] sm:$0xff] }
 0x1e3   :  { %v1670_v39 = vadd.f32 %v1669_v59, %v3924_v26  ;;  %v1826_v40 = vsel %vm344_vm5, %v3922_v22, %v3928_v43  ;;  %v1713_v18 = vrot.slane %v1712_v58, 1  ;;  %v1762_v45 = vrot.slane %v1761_v10, 1 }
 0x1e4   :  { %v1143_v30 = vsel %vm348_vm7, %v1084_v11, %v1142_v36  ;;  %v1664_v28 = vrot.slane %v3941_v13, 1  ;;  %v1707_v49 = vadd.f32 %v1706_v2, %v3950_v44  ;;  %v1756_v52 = vadd.f32 %v1755_v5, %v1754_v61  ;;  %v3095_v61 = vld [vmem:[#allocation13 + $0x8] sm:$0xff]  ;;  %v2125_v5 = vld [vmem:[#allocation19 + $0x30] sm:$0xff] }
 0x1e5   :  { %v1144_v20 = vsel %vm350_vm8, %v1091_v23, %v1143_v30  ;;  %v1781_v46 = vrot.slane %v1780_v33, 2  ;;  %v1726_v26 = vadd.f32 %v1725_v27, %v3954_v50  ;;  %v1833_v22 = vsel %vm344_vm5, %v3958_v4, %v1832_v7  ;;  %v3100_v7 = vld [vmem:[#allocation14] sm:$0xff]  ;;  %2961 = vmatpush3.msra.mxu1 %v2125_v5  ;;  %v2122_v27 = vld [vmem:[#allocation19 + $0x18] sm:$0xff] }
 0x1e6   :  { %v1145_v24 = vsel %vm352_vm9, %v1098_v62, %v1144_v20  ;;  %v1775_v43 = vadd.f32 %v1774_v42, %v1773_v25  ;;  %v1839_v59 = vsel %vm342_vm4, %v1749_v38, %v1838_v6  ;;  %v1822_v12 = vsel %vm350_vm8, %v3913_v57, %v3908_v16  ;;  %2962 = vmatprep.subr.mxu1 %v3438_v0  ;;  %v2123_v20 = vld [vmem:[#allocation19 + $0x20] sm:$0xff]  ;;  %v2121_v38 = vld [vmem:[#allocation19 + $0x10] sm:$0xff]  ;;  %v2120_v42 = vld [vmem:[#allocation19 + $0x8] sm:$0xff] }
 0x1e7   :  { %2820 = vmatmul.mubr.f32.vlgmr.msra.gmra.mxu0 %v1145_v24  ;;  %v1658_v44 = vadd.f32 %v1657_v56, %v3920_v32  ;;  %v1720_v53 = vrot.slane %v1719_v41, 1  ;;  %v1769_v35 = vrot.slane %v1768_v51, 1  ;;  %v1381_v50 = vsel %vm352_vm9, %v3895_v29, %v3899_v34  ;;  %v2119_v24 = vld [vmem:[#allocation19] sm:$0xff]  ;;  %v2148_v6 = vld [vmem:[#allocation20 + $0x68] sm:$0xff] }
 0x1e8   :  { %2858 = vmatpush3.msra.mxu0 %v3093_v14  ;;  %2865 = vmatprep.mubr.msk.f32.mxu0 %vm3439_vm0, %v3438_v0  ;;  %v1827_v4 = vsel %vm346_vm6, %v3930_v48, %v1826_v40  ;;  %v1714_v54 = vadd.f32 %v1713_v18, %v1712_v58  ;;  %v1763_v47 = vadd.f32 %v1762_v45, %v1761_v10  ;;  %v1671_v16 = vrot.slane %v1670_v39, 1  ;;  %v3096_v48 = vld [vmem:[#allocation13] sm:$0xff]  ;;  %v2146_v40 = vld [vmem:[#allocation20 + $0x58] sm:$0xff]  ;;  %v2145_v18 = vld [vmem:[#allocation20 + $0x50] sm:$0xff] }
 0x1e9   :  { %2859 = vmatprep.subr.mxu0 %v3438_v0  ;;  %v1834_v57 = vsel %vm346_vm6, %v1707_v49, %v1833_v22  ;;  %v1782_v17 = vadd.f32 %v1781_v46, %v1780_v33  ;;  %v1840_v32 = vsel %vm344_vm5, %v1756_v52, %v1839_v59  ;;  %v1823_v56 = vsel %vm352_vm9, %v3918_v31, %v1822_v12  ;;  %v2124_v33 = vld [vmem:[#allocation19 + $0x28] sm:$0xff]  ;;  %v2143_v14 = vld [vmem:[#allocation20 + $0x40] sm:$0xff]  ;;  %v2141_v49 = vld [vmem:[#allocation20 + $0x30] sm:$0xff] }
 0x1ea   :  { %2860 = vmatpush3.msra.mxu0 %v3094_v19  ;;  %v1665_v29 = vadd.f32 %v1664_v28, %v3941_v13  ;;  %v1727_v34 = vrot.slane %v1726_v26, 1  ;;  %v1776_v55 = vrot.slane %v1775_v43, 1  ;;  %v1828_v37 = vsel %vm348_vm7, %v1658_v44, %v1827_v4  ;;  %2963 = vmatpush3.msra.mxu1 %v2124_v33  ;;  %v2144_v45 = vld [vmem:[#allocation20 + $0x48] sm:$0xff]  ;;  %v2142_v28 = vld [vmem:[#allocation20 + $0x38] sm:$0xff]  ;;  %v2139_v46 = vld [vmem:[#allocation20 + $0x20] sm:$0xff] }
 0x1eb   :  { %2861 = vmatprep.subr.mxu0 %v3438_v0  ;;  %v1721_v60 = vadd.f32 %v1720_v53, %v1719_v41  ;;  %v1770_v63 = vadd.f32 %v1769_v35, %v1768_v51  ;;  %v1835_v2 = vsel %vm348_vm7, %v1714_v54, %v1834_v57  ;;  %v1841_v8 = vsel %vm346_vm6, %v1763_v47, %v1840_v32  ;;  %v2150_v41 = vld [vmem:[#allocation20 + $0x78] sm:$0xff]  ;;  %v2149_v51 = vld [vmem:[#allocation20 + $0x70] sm:$0xff]  ;;  %v2140_v52 = vld [vmem:[#allocation20 + $0x28] sm:$0xff] }
 0x1ec   :  { %2862 = vmatpush3.msra.mxu0 %v3095_v61  ;;  %v1672_v31 = vadd.f32 %v1671_v16, %v1670_v39  ;;  %v1783_v13 = vrot.slane %v1782_v17, 1  ;;  %v1829_v25 = vsel %vm350_vm8, %v1665_v29, %v1828_v37  ;;  %v1728_v9 = vadd.f32 %v1727_v34, %v1726_v26  ;;  %2964 = vmatprep.subr.mxu1 %v3438_v0  ;;  %v2147_v39 = vld [vmem:[#allocation20 + $0x60] sm:$0xff]  ;;  %v2138_v22 = vld [vmem:[#allocation20 + $0x18] sm:$0xff]  ;;  %v2137_v59 = vld [vmem:[#allocation20 + $0x10] sm:$0xff] }
 0x1ed   :  { %2863 = vmatprep.subr.mxu0 %v3438_v0  ;;  %v1777_v11 = vadd.f32 %v1776_v55, %v1775_v43  ;;  %v1836_v36 = vsel %vm350_vm8, %v1721_v60, %v1835_v2  ;;  %v1842_v1 = vsel %vm348_vm7, %v1770_v63, %v1841_v8  ;;  %2965 = vmatpush3.msra.mxu1 %v2123_v20  ;;  %v2136_v19 = vld [vmem:[#allocation20 + $0x8] sm:$0xff]  ;;  %v2135_v12 = vld [vmem:[#allocation20] sm:$0xff] }
 0x1ee   :  { %2864 = vmatpush3.msra.mxu0 %v3096_v48  ;;  %v1830_v23 = vsel %vm352_vm9, %v1672_v31, %v1829_v25  ;;  %v1784_v58 = vadd.f32 %v1783_v13, %v1782_v17  ;;  %v1837_v10 = vsel %vm352_vm9, %v1728_v9, %v1836_v36  ;;  %2966 = vmatprep.subr.mxu1 %v3438_v0 }
 0x1ef   :  { %2866 = vmatmul.mubr.msk.f32.vlgmr.msra.gmra.mxu0 %vm354_vm1, %v1381_v50  ;;  %2879 = vmatprep.subr.mxu0 %v3097_v3  ;;  %v1843_v62 = vsel %vm350_vm8, %v1777_v11, %v1842_v1  ;;  %v2571_v50 = vld [vmem:[%s4183_s13] ss:$0 sm:$0xff] }
 0x1f0   :  { %2880 = vmatpush3.msra.mxu0 %v3097_v3  ;;  %2887 = vmatprep.mubr.msk.f32.mxu0 %vm354_vm1, %v1823_v56  ;;  %v1844_v30 = vsel %vm352_vm9, %v1784_v58, %v1843_v62  ;;  %v3101_v56 = vld [vmem:[%s4180_s10] ss:$0 sm:$0xff] }
 0x1f1   :  { %2881 = vmatprep.subr.mxu0 %v3098_v15  ;;  %2967 = vmatpush3.msra.mxu1 %v2122_v27 }
 0x1f2   :  { %2882 = vmatpush3.msra.mxu0 %v3098_v15  ;;  %2968 = vmatprep.subr.mxu1 %v3438_v0 }
 0x1f3   :  { %2883 = vmatprep.subr.mxu0 %v3099_v21  ;;  %2969 = vmatpush3.msra.mxu1 %v2121_v38 }
 0x1f4   :  { %2884 = vmatpush3.msra.mxu0 %v3099_v21  ;;  %2970 = vmatprep.subr.mxu1 %v3438_v0 }
 0x1f5   :  { %2885 = vmatprep.subr.mxu0 %v3100_v7  ;;  %2971 = vmatpush3.msra.mxu1 %v2120_v42 }
 0x1f6   :  { %2886 = vmatpush3.msra.mxu0 %v3100_v7  ;;  %2972 = vmatprep.subr.mxu1 %v3438_v0 }
 0x1f7   :  { %2888 = vmatmul.mubr.msk.f32.vlgmr.msra.gmra.mxu0 %vm354_vm1, %v1830_v23  ;;  %2907 = vmatprep.subr.mxu0 %v3438_v0 }
 0x1f8   :  { %2890 = vmatprep.mubr.msk.f32.mxu0 %vm354_vm1, %v1837_v10  ;;  %2973 = vmatpush3.msra.mxu1 %v2119_v24 }
 0x1f9   :  { %3012 = vmatprep.subr.mxu1 %v3438_v0  ;;  %2908 = vmatpush3.msra.mxu0 %v2150_v41 }
 0x1fa   :  { %2909 = vmatprep.subr.mxu0 %v3438_v0 }
 0x1fb   :  { %2891 = vmatmul.mubr.msk.f32.gmra.mxu0 %vm354_vm1, %v1844_v30 }
 0x1fc   :  { %2939 = vmatprep.mubr.msk.f32.mxu0 %vm3439_vm0, %v3438_v0  ;;  %2910 = vmatpush3.msra.mxu0 %v2149_v51 }
 0x1fd   :  { %2911 = vmatprep.subr.mxu0 %v3438_v0 }
 0x1fe   :  { %2912 = vmatpush3.msra.mxu0 %v2148_v6 }
 0x1ff   :  { %2913 = vmatprep.subr.mxu0 %v3438_v0 }
 0x200   :  { %2914 = vmatpush3.msra.mxu0 %v2147_v39 }
 0x201   :  { %2915 = vmatprep.subr.mxu0 %v3438_v0 }
 0x202   :  { %2916 = vmatpush3.msra.mxu0 %v2146_v40 }
 0x203   :  { %2917 = vmatprep.subr.mxu0 %v3438_v0 }
 0x204   :  { %2918 = vmatpush3.msra.mxu0 %v2145_v18 }
 0x205   :  { %2919 = vmatprep.subr.mxu0 %v3438_v0 }
 0x206   :  { %2920 = vmatpush3.msra.mxu0 %v2144_v45 }
 0x207   :  { %2921 = vmatprep.subr.mxu0 %v3438_v0 }
 0x208   :  { %2922 = vmatpush3.msra.mxu0 %v2143_v14 }
 0x209   :  { %2923 = vmatprep.subr.mxu0 %v3438_v0 }
 0x20a   :  { %2924 = vmatpush3.msra.mxu0 %v2142_v28 }
 0x20b   :  { %2925 = vmatprep.subr.mxu0 %v3438_v0 }
 0x20c   :  { %2926 = vmatpush3.msra.mxu0 %v2141_v49 }
 0x20d   :  { %2927 = vmatprep.subr.mxu0 %v3438_v0 }
 0x20e   :  { %2928 = vmatpush3.msra.mxu0 %v2140_v52 }
 0x20f   :  { %2929 = vmatprep.subr.mxu0 %v3438_v0 }
 0x210   :  { %2930 = vmatpush3.msra.mxu0 %v2139_v46 }
 0x211   :  { %2931 = vmatprep.subr.mxu0 %v3438_v0 }
 0x212   :  { %2932 = vmatpush3.msra.mxu0 %v2138_v22 }
 0x213   :  { %2933 = vmatprep.subr.mxu0 %v3438_v0 }
 0x214   :  { %2934 = vmatpush3.msra.mxu0 %v2137_v59 }
 0x215   :  { %2935 = vmatprep.subr.mxu0 %v3438_v0 }
 0x216   :  { %2936 = vmatpush3.msra.mxu0 %v2136_v19 }
 0x217   :  { %2937 = vmatprep.subr.mxu0 %v3438_v0 }
 0x218   :  { %2938 = vmatpush3.msra.mxu0 %v2135_v12 }
 0x219   :  { %2977 = vmatprep.subr.mxu0 %v3438_v0 }
 0x251   :  { %v1283_v26 = vpop.f32.mrf.mxu1 }
 0x253   :  { %v2856_v43 = vpop.f32.mrf.mxu1 }
 0x259   :  { %v1523_v44 = vpop.f32.mrf.mxu1 }
 0x25b   :  { %v2878_v53 = vpop.f32.mrf.mxu1 }
 0x261   :  { %v2903_v34 = vpop.f32.mrf.mxu1 }
 0x263   :  { %v2024_v48 = vpop.f32.mrf.mxu1 }
 0x265   :  { %v2906_v8 = vpop.f32.mrf.mxu1 }
 0x267   :  { %v2034_v23 = vpop.f32.mrf.mxu1 }
 0x2a7   :  { %v1213_v35 = vpop.f32.mrf.mxu0 }
 0x2a8   :  { %v1284_v4 = vadd.f32 %v1283_v26, %v1213_v35 }
 0x2a9   :  { %v2821_v54 = vpop.f32.mrf.mxu0 }
 0x2aa   :  { %v1294_v47 = vadd.f32 %v2571_v50, %v1284_v4 }
 0x2ac   :  { %v4089_v61 = vmax.f32 %v1294_v47, 0.0 }
 0x2ae   :  { %v1296_v16 = vmul.f32 %v4089_v61, %v4089_v61 }
 0x2af   :  { %v1450_v57 = vpop.f32.mrf.mxu0 }
 0x2b0   :  { %v1524_v17 = vadd.f32 %v1523_v44, %v1450_v57  ;;  %1297 = vadd.xlane.f32.xlu0 %v1296_v16 }
 0x2b1   :  { %v2867_v32 = vpop.f32.mrf.mxu0 }
 0x2b2   :  { %v1527_v29 = vadd.f32 %v3101_v56, %v1524_v17 }
 0x2b4   :  { %v1528_v55 = vmax.f32 %v1527_v29, 0.0 }
 0x2b6   :  { %2975 = vmatmul.mubr.f32.vlgmr.msra.gmra.mxu1 %v1528_v55 }
 0x2b7   :  { %v2889_v37 = vpop.f32.mrf.mxu0  ;;  %3044 = vmatprep.mubr.msk.f32.mxu1 %vm3439_vm0, %v3438_v0 }
 0x2b8   :  { %v2030_v60 = vadd.f32 %v2903_v34, %v2889_v37 }
 0x2b9   :  { %v1919_v63 = vpop.f32.mrf.mxu0 }
 0x2ba   :  { %v2044_v3 = vadd.f32 %v3101_v56, %v2030_v60  ;;  %v2025_v2 = vadd.f32 %v2024_v48, %v1919_v63 }
 0x2bb   :  { %v2892_v31 = vpop.f32.mrf.mxu0 }
 0x2bc   :  { %v2048_v13 = vmax.f32 %v2044_v3, 0.0  ;;  %v2043_v15 = vadd.f32 %v3101_v56, %v2025_v2  ;;  %v2040_v25 = vadd.f32 %v2906_v8, %v2892_v31 }
 0x2bd   :  { %v1929_v9 = vpop.f32.mrf.mxu0 }
 0x2be   :  { %v2056_v11 = vcombine.high %v2048_v13, %v2048_v13  ;;  %v2077_v36 = vsel %vm1042_vm10, %v2048_v13, 0.0  ;;  %v2047_v1 = vmax.f32 %v2043_v15, 0.0  ;;  %v2046_v21 = vadd.f32 %v3101_v56, %v2040_v25 }
 0x2bf   :  { %v2078_v58 = vrot.slane %v2077_v36, 4  ;;  %v2035_v7 = vadd.f32 %v2034_v23, %v1929_v9 }
 0x2c0   :  { %v2084_v10 = vsel %vm1042_vm10, %v2056_v11, 0.0  ;;  %v2055_v62 = vcombine.high %v2047_v1, %v2047_v1  ;;  %v2063_v30 = vsel %vm1042_vm10, %v2047_v1, 0.0  ;;  %v2050_v5 = vmax.f32 %v2046_v21, 0.0 }
 0x2c1   :  { %v2079_v33 = vadd.f32 %v2078_v58, %v2077_v36  ;;  %v2085_v20 = vrot.slane %v2084_v10, 4  ;;  %v2064_v27 = vrot.slane %v2063_v30, 4  ;;  %v2045_v38 = vadd.f32 %v3101_v56, %v2035_v7 }
 0x2c2   :  { %v2070_v42 = vsel %vm1042_vm10, %v2055_v62, 0.0  ;;  %v2058_v24 = vcombine.high %v2050_v5, %v2050_v5  ;;  %v2105_v41 = vsel %vm1042_vm10, %v2050_v5, 0.0 }
 0x2c3   :  { %v2080_v51 = vrot.slane %v2079_v33, 2  ;;  %v2086_v6 = vadd.f32 %v2085_v20, %v2084_v10  ;;  %v2065_v39 = vadd.f32 %v2064_v27, %v2063_v30  ;;  %v2071_v40 = vrot.slane %v2070_v42, 4 }
 0x2c4   :  { %v2106_v18 = vrot.slane %v2105_v41, 4  ;;  %v2112_v45 = vsel %vm1042_vm10, %v2058_v24, 0.0  ;;  %v2049_v14 = vmax.f32 %v2045_v38, 0.0 }
 0x2c5   :  { %v2081_v28 = vadd.f32 %v2080_v51, %v2079_v33  ;;  %v2087_v49 = vrot.slane %v2086_v6, 2  ;;  %v2066_v52 = vrot.slane %v2065_v39, 2  ;;  %v2072_v46 = vadd.f32 %v2071_v40, %v2070_v42 }
 0x2c6   :  { %v2107_v26 = vadd.f32 %v2106_v18, %v2105_v41  ;;  %v2113_v22 = vrot.slane %v2112_v45, 4  ;;  %v2057_v43 = vcombine.high %v2049_v14, %v2049_v14  ;;  %v2091_v59 = vsel %vm1042_vm10, %v2049_v14, 0.0 }
 0x2c7   :  { %v2088_v19 = vadd.f32 %v2087_v49, %v2086_v6  ;;  %v2067_v12 = vadd.f32 %v2066_v52, %v2065_v39  ;;  %v2073_v44 = vrot.slane %v2072_v46, 2  ;;  %v2092_v35 = vrot.slane %v2091_v59, 4  ;;  %v2582_v39 = vld [vmem:[%s4186_s16] ss:$0 sm:$0xff]  ;;  %v2365_v52 = vld [vmem:[#allocation23 + $0x70] sm:$0xff] }
 0x2c8   :  { %v2114_v53 = vadd.f32 %v2113_v22, %v2112_v45  ;;  %v2098_v50 = vsel %vm1042_vm10, %v2057_v43, 0.0  ;;  %v2108_v47 = vrot.slane %v2107_v26, 2  ;;  %v2082_v16 = vrot.slane %v2081_v28, 1  ;;  %v2366_v49 = vld [vmem:[#allocation23 + $0x78] sm:$0xff]  ;;  %v2347_v22 = vld [vmem:[#allocation22 + $0x68] sm:$0xff]  ;;  %v2363_v43 = vld [vmem:[#allocation23 + $0x60] sm:$0xff] }
 0x2c9   :  { %v2068_v4 = vrot.slane %v2067_v12, 1  ;;  %v2074_v54 = vadd.f32 %v2073_v44, %v2072_v46  ;;  %v2093_v17 = vadd.f32 %v2092_v35, %v2091_v59  ;;  %v2099_v32 = vrot.slane %v2098_v50, 4  ;;  %v2348_v46 = vld [vmem:[#allocation22 + $0x70] sm:$0xff]  ;;  %v2346_v59 = vld [vmem:[#allocation22 + $0x60] sm:$0xff] }
 0x2ca   :  { %v2115_v57 = vrot.slane %v2114_v53, 2  ;;  %v2089_v56 = vrot.slane %v2088_v19, 1  ;;  %v2109_v60 = vadd.f32 %v2108_v47, %v2107_v26  ;;  %v2083_v63 = vadd.f32 %v2082_v16, %v2081_v28  ;;  %v2364_v26 = vld [vmem:[#allocation23 + $0x68] sm:$0xff]  ;;  %v2361_v44 = vld [vmem:[#allocation23 + $0x50] sm:$0xff] }
 0x2cb   :  { %v2075_v29 = vrot.slane %v2074_v54, 1  ;;  %v2094_v34 = vrot.slane %v2093_v17, 2  ;;  %v2100_v55 = vadd.f32 %v2099_v32, %v2098_v50  ;;  %v2069_v48 = vadd.f32 %v2068_v4, %v2067_v12  ;;  %v2345_v12 = vld [vmem:[#allocation22 + $0x58] sm:$0xff]  ;;  %v2359_v32 = vld [vmem:[#allocation23 + $0x40] sm:$0xff] }
 0x2cc   :  { %v2116_v3 = vadd.f32 %v2115_v57, %v2114_v53  ;;  %v2090_v31 = vadd.f32 %v2089_v56, %v2088_v19  ;;  %v2110_v11 = vrot.slane %v2109_v60, 1  ;;  %v2362_v19 = vld [vmem:[#allocation23 + $0x58] sm:$0xff]  ;;  %v2344_v53 = vld [vmem:[#allocation22 + $0x50] sm:$0xff]  ;;  %v2360_v57 = vld [vmem:[#allocation23 + $0x48] sm:$0xff] }
 0x2cd   :  { %v2076_v37 = vadd.f32 %v2075_v29, %v2074_v54  ;;  %v2095_v2 = vadd.f32 %v2094_v34, %v2093_v17  ;;  %v2101_v8 = vrot.slane %v2100_v55, 2  ;;  %v2343_v17 = vld [vmem:[#allocation22 + $0x48] sm:$0xff]  ;;  %v2342_v56 = vld [vmem:[#allocation22 + $0x40] sm:$0xff]  ;;  %v2358_v29 = vld [vmem:[#allocation23 + $0x38] sm:$0xff] }
 0x2ce   :  { %v2117_v1 = vrot.slane %v2116_v3, 1  ;;  %v2111_v10 = vadd.f32 %v2110_v11, %v2109_v60  ;;  %v2341_v34 = vld [vmem:[#allocation22 + $0x38] sm:$0xff]  ;;  %v2339_v60 = vld [vmem:[#allocation22 + $0x28] sm:$0xff]  ;;  %v2334_v11 = vld [vmem:[#allocation22] sm:$0xff] }
 0x2cf   :  { %v2159_v13 = vsel %vm340_vm3, %v2076_v37, %v2069_v48  ;;  %v2096_v25 = vrot.slane %v2095_v2, 1  ;;  %v2102_v9 = vadd.f32 %v2101_v8, %v2100_v55  ;;  %v2357_v55 = vld [vmem:[#allocation23 + $0x30] sm:$0xff]  ;;  %v2356_v37 = vld [vmem:[#allocation23 + $0x28] sm:$0xff]  ;;  %v2337_v8 = vld [vmem:[#allocation22 + $0x18] sm:$0xff] }
 0x2d0   :  { %v2160_v15 = vsel %vm342_vm4, %v2083_v63, %v2159_v13  ;;  %v2118_v62 = vadd.f32 %v2117_v1, %v2116_v3  ;;  %v2340_v48 = vld [vmem:[#allocation22 + $0x30] sm:$0xff]  ;;  %v2355_v63 = vld [vmem:[#allocation23 + $0x20] sm:$0xff]  ;;  %v3440_v1 = vmov 0  }
 0x2d1   :  { %v2161_v36 = vsel %vm344_vm5, %v2090_v31, %v2160_v15  ;;  %v2097_v21 = vadd.f32 %v2096_v25, %v2095_v2  ;;  %v2103_v23 = vrot.slane %v2102_v9, 1  ;;  %v2338_v3 = vld [vmem:[#allocation22 + $0x20] sm:$0xff]  ;;  %v2354_v2 = vld [vmem:[#allocation23 + $0x18] sm:$0xff]  ;;  %v2353_v31 = vld [vmem:[#allocation23 + $0x10] sm:$0xff]  ;;  %3069 = vset.pattern.permute.xlu1 %v3440_v1  ;;  %3070 = vset.pattern.permute.xlu0 %v3440_v1 }
 0x2d2   :  { %v2336_v13 = vld [vmem:[#allocation22 + $0x10] sm:$0xff]  ;;  %v2352_v15 = vld [vmem:[#allocation23 + $0x8] sm:$0xff] }
 0x2d3   :  { %v2104_v58 = vadd.f32 %v2103_v23, %v2102_v9  ;;  %v2162_v7 = vsel %vm346_vm6, %v2097_v21, %v2161_v36  ;;  %v2335_v25 = vld [vmem:[#allocation22 + $0x8] sm:$0xff]  ;;  %v2351_v9 = vld [vmem:[#allocation23] sm:$0xff]  ;;  %v2523_v36 = vld [vmem:[%s4176_s6] sm:$0xff]  ;;  %s3441_s6 = smov [#allocation25]  }
 0x2d4   :  { %s2540_s15 = sshll.u32 %s3441_s6, 4  ;;  %s2541_s15 = int_to_ptr.vmem [resolvable:$true] %s2540_s15 }
 0x2d5   :  { %v2163_v30 = vsel %vm348_vm7, %v2104_v58, %v2162_v7  ;;  %s3382_s26 = scalar_lea.vmem %s2541_s15, 128  ;;  %p3387_p1 = scmp.lt.s32.totalorder %s2541_s15, %s2541_s15 }
 0x2d6   :  { %v2164_v5 = vsel %vm350_vm8, %v2111_v10, %v2163_v30  ;;  %v2508_v30 = vlaneseq  ;;  %p3383_p0 = scmp.ne.s32.totalorder %s2541_s15, %s3382_s26  ;;  %p3388_p2 = scmp.lt.s32.totalorder %s3382_s26, %s3382_s26 }
 0x2d7   :  { %v2165_v33 = vsel %vm352_vm9, %v2118_v62, %v2164_v5 }
 0x2d8   :  { %2940 = vmatmul.mubr.f32.vlgmr.msra.gmra.mxu0 %v2165_v33  ;;  %v2509_v5 = vand.u32 127, %v2508_v30  ;;  %p3389_p3 = por %p3388_p2, %p3387_p1 }
 0x2d9   :  { %3009 = vmatprep.mubr.msk.f32.mxu0 %vm3439_vm0, %v3438_v0  ;;  %2978 = vmatpush3.msra.mxu0 %v2366_v49 }
 0x2da   :  { %2979 = vmatprep.subr.mxu0 %v3438_v0  ;;  %vm2510_vm12 = vcmp.lt.s32.totalorder %v2509_v5, 4  ;;  %p3390_p4 = pnand %p3389_p3, %p3383_p0 }
 0x2db   :  { %2980 = vmatpush3.msra.mxu0 %v2365_v52 }
 0x2dc   :  { %2981 = vmatprep.subr.mxu0 %v3438_v0 }
 0x2dd   :  { %2982 = vmatpush3.msra.mxu0 %v2364_v26 }
 0x2de   :  { %2983 = vmatprep.subr.mxu0 %v3438_v0 }
 0x2df   :  { %2984 = vmatpush3.msra.mxu0 %v2363_v43 }
 0x2e0   :  { %2985 = vmatprep.subr.mxu0 %v3438_v0 }
 0x2e1   :  { %2986 = vmatpush3.msra.mxu0 %v2362_v19 }
 0x2e2   :  { %2987 = vmatprep.subr.mxu0 %v3438_v0 }
 0x2e3   :  { %2988 = vmatpush3.msra.mxu0 %v2361_v44 }
 0x2e4   :  { %2989 = vmatprep.subr.mxu0 %v3438_v0 }
 0x2e5   :  { %2990 = vmatpush3.msra.mxu0 %v2360_v57 }
 0x2e6   :  { %2991 = vmatprep.subr.mxu0 %v3438_v0 }
 0x2e7   :  { %2992 = vmatpush3.msra.mxu0 %v2359_v32 }
 0x2e8   :  { %2993 = vmatprep.subr.mxu0 %v3438_v0 }
 0x2e9   :  { %2994 = vmatpush3.msra.mxu0 %v2358_v29 }
 0x2ea   :  { %2995 = vmatprep.subr.mxu0 %v3438_v0 }
 0x2eb   :  { %2996 = vmatpush3.msra.mxu0 %v2357_v55 }
 0x2ec   :  { %2997 = vmatprep.subr.mxu0 %v3438_v0 }
 0x2ed   :  { %2998 = vmatpush3.msra.mxu0 %v2356_v37 }
 0x2ee   :  { %2999 = vmatprep.subr.mxu0 %v3438_v0 }
 0x2ef   :  { %3000 = vmatpush3.msra.mxu0 %v2355_v63 }
 0x2f0   :  { %3001 = vmatprep.subr.mxu0 %v3438_v0 }
 0x2f1   :  { %3002 = vmatpush3.msra.mxu0 %v2354_v2 }
 0x2f2   :  { %3003 = vmatprep.subr.mxu0 %v3438_v0 }
 0x2f3   :  { %3004 = vmatpush3.msra.mxu0 %v2353_v31 }
 0x2f4   :  { %3005 = vmatprep.subr.mxu0 %v3438_v0 }
 0x2f5   :  { %3006 = vmatpush3.msra.mxu0 %v2352_v15 }
 0x2f6   :  { %3007 = vmatprep.subr.mxu0 %v3438_v0 }
 0x2f7   :  { %3008 = vmatpush3.msra.mxu0 %v2351_v9 }
 0x339   :  { %v1298_v20 = vpop.xlane.xlu0 %1297 }
 0x33a   :  { %v1299_v27 = vmax.f32 %v1298_v20, 1e-24 }
 0x33c   :  { %3079 = vrsqrt.f32 %v1299_v27 }
 0x349   :  { %v3080_v38 = vpop.eup %3079 }
 0x34a   :  { %v4116_v42 = vmul.f32 %v3080_v38, %v4089_v61  ;;  %v2349_v61 = vld [vmem:[#allocation22 + $0x78] sm:$0xff] }
 0x34b   :  { %3013 = vmatpush3.msra.mxu1 %v2349_v61 }
 0x34c   :  { %v2324_v24 = vmul.f32 %v4116_v42, %v4116_v42  ;;  %3014 = vmatprep.subr.mxu1 %v3438_v0 }
 0x34d   :  { %3015 = vmatpush3.msra.mxu1 %v2348_v46 }
 0x34e   :  { %2325 = vadd.xlane.f32.xlu1 %v2324_v24  ;;  %3016 = vmatprep.subr.mxu1 %v3438_v0 }
 0x34f   :  { %3017 = vmatpush3.msra.mxu1 %v2347_v22 }
 0x350   :  { %3018 = vmatprep.subr.mxu1 %v3438_v0 }
 0x351   :  { %3019 = vmatpush3.msra.mxu1 %v2346_v59 }
 0x352   :  { %3020 = vmatprep.subr.mxu1 %v3438_v0 }
 0x353   :  { %3021 = vmatpush3.msra.mxu1 %v2345_v12 }
 0x354   :  { %3022 = vmatprep.subr.mxu1 %v3438_v0 }
 0x355   :  { %3023 = vmatpush3.msra.mxu1 %v2344_v53 }
 0x356   :  { %3024 = vmatprep.subr.mxu1 %v3438_v0 }
 0x357   :  { %3025 = vmatpush3.msra.mxu1 %v2343_v17 }
 0x358   :  { %3026 = vmatprep.subr.mxu1 %v3438_v0 }
 0x359   :  { %3027 = vmatpush3.msra.mxu1 %v2342_v56 }
 0x35a   :  { %3028 = vmatprep.subr.mxu1 %v3438_v0 }
 0x35b   :  { %3029 = vmatpush3.msra.mxu1 %v2341_v34 }
 0x35c   :  { %3030 = vmatprep.subr.mxu1 %v3438_v0 }
 0x35d   :  { %3031 = vmatpush3.msra.mxu1 %v2340_v48 }
 0x35e   :  { %3032 = vmatprep.subr.mxu1 %v3438_v0 }
 0x35f   :  { %3033 = vmatpush3.msra.mxu1 %v2339_v60 }
 0x360   :  { %3034 = vmatprep.subr.mxu1 %v3438_v0 }
 0x361   :  { %3035 = vmatpush3.msra.mxu1 %v2338_v3 }
 0x362   :  { %3036 = vmatprep.subr.mxu1 %v3438_v0 }
 0x363   :  { %3037 = vmatpush3.msra.mxu1 %v2337_v8 }
 0x364   :  { %3038 = vmatprep.subr.mxu1 %v3438_v0 }
 0x365   :  { %3039 = vmatpush3.msra.mxu1 %v2336_v13 }
 0x366   :  { %3040 = vmatprep.subr.mxu1 %v3438_v0 }
 0x367   :  { %3041 = vmatpush3.msra.mxu1 %v2335_v25 }
 0x368   :  { %3042 = vmatprep.subr.mxu1 %v3438_v0 }
 0x369   :  { %3043 = vmatpush3.msra.mxu1 %v2334_v11 }
 0x376   :  { %v2303_v41 = vpop.f32.mrf.mxu1 }
 0x378   :  { %v2976_v51 = vpop.f32.mrf.mxu1 }
 0x398   :  { %v2233_v6 = vpop.f32.mrf.mxu0 }
 0x399   :  { %v2304_v40 = vadd.f32 %v2303_v41, %v2233_v6 }
 0x39a   :  { %v2941_v18 = vpop.f32.mrf.mxu0 }
 0x39b   :  { %v2314_v45 = vadd.f32 %v2582_v39, %v2304_v40 }
 0x39d   :  { %v2315_v14 = vmax.f32 %v2314_v45, 0.0 }
 0x39f   :  { %v2316_v28 = vmul.f32 %v2315_v14, %v2315_v14 }
 0x3a1   :  { %2317 = vadd.xlane.f32.xlu0 %v2316_v28 }
 0x3d7   :  { %v2326_v21 = vpop.xlane.xlu1 %2325 }
 0x42a   :  { %v2318_v35 = vpop.xlane.xlu0 %2317 }
 0x42b   :  { %v2319_v50 = vmax.f32 %v2318_v35, 1e-24 }
 0x42d   :  { %3081 = vrsqrt.f32 %v2319_v50 }
 0x43a   :  { %v3082_v4 = vpop.eup %3081 }
 0x43b   :  { %v4135_v54 = vmul.f32 %v3082_v4, %v2315_v14 }
 0x43d   :  { %v2327_v47 = vmul.f32 %v4135_v54, %v4135_v54  ;;  %v2322_v16 = vadd.f32 %v4135_v54, %v4116_v42 }
 0x43f   :  { %2328 = vadd.xlane.f32.xlu1 %v2327_v47  ;;  %2323 = vst [vmem:[#allocation25] sm:$0xff] %v2322_v16 }
 0x450   :  { %2525 = vperm.xlu1 %3069, %v2523_v36  }
 0x4c8   :  { %v2329_v23 = vpop.xlane.xlu1 %2328 }
 0x4c9   :  { %v2330_v58 = vadd.f32 %v2329_v23, %v2326_v21 }
 0x4cb   :  { %v2331_v7 = vmax.f32 %v2330_v58, 1e-24 }
 0x4cc   :  { %v2526_v33 = vpop.permute.xlu1 %2525 }
 0x4cd   :  { %3083 = vrsqrt.f32 %v2331_v7  ;;  %vm2527_vm11 = vcmp.eq.s32.totalorder %v2509_v5, %v2526_v33 }
 0x4da   :  { %v3084_v10 = vpop.eup %3083 }
 0x4db   :  { %v2350_v62 = vmul.f32 %v3084_v10, %v4135_v54  ;;  %v2333_v0 = vmul.f32 %v3084_v10, %v4116_v42 }
 0x4dd   :  { %3010 = vmatmul.mubr.f32.vlgmr.msra.gmra.mxu0 %v2350_v62  ;;  %3045 = vmatmul.mubr.f32.vlgmr.msra.gmra.mxu1 %v2333_v0 }
 0x59d   :  { %v2433_v20 = vpop.f32.mrf.mxu0  ;;  %v2503_v27 = vpop.f32.mrf.mxu1 }
 0x59e   :  { %v2504_v38 = vadd.f32 %v2503_v27, %v2433_v20 }
 0x59f   :  { %v3011_v24 = vpop.f32.mrf.mxu0  ;;  %v3046_v41 = vpop.f32.mrf.mxu1 }
 0x5a0   :  { %v2507_v51 = vmul.f32 20.0, %v2504_v38 }
 0x5a2   :  { %v2511_v6 = vsel %vm2510_vm12, %v2507_v51, -1e+30  ;;  %v2528_v39 = vsel %vm2527_vm11, %v2507_v51, 0.0 }
 0x5a3   :  { %2512 = vmax.xlane.f32.xlu0 %v2511_v6 }
 0x62c   :  { %v2513_v40 = vpop.xlane.xlu0 %2512 }
 0x62d   :  { %v2514_v18 = vsub.f32 %v2511_v6, %v2513_v40 }
 0x62f   :  { %v2515_v45 = vmul.f32 1.442695, %v2514_v18 }
 0x631   :  { %3085 = vpow2.f32 %v2515_v45 }
 0x63e   :  { %v3086_v42 = vpop.eup %3085 }
 0x63f   :  { %v2517_v14 = vsel %vm2510_vm12, %v3086_v42, 0.0 }
 0x640   :  { %2518 = vadd.xlane.f32.xlu0 %v2517_v14 }
 0x644   :  { %2529 = vadd.xlane.f32.xlu0 %v2528_v39 }
 0x645   :  { %3393 = shalt.err (!%p3390_p4)
}
 0x646   :  { %2543 = dma.vmem_to_hbm [thread:$0]  %s2541_s15, 128, %s4189_s19, [#allocation4]   ;;  %vm2532_vm13 = vcmask 7168  }
 0x6c9   :  { %v2519_v28 = vpop.xlane.xlu0 %2518 }
 0x6ca   :  { %3087 = vlog2.f32 %v2519_v28 }
 0x6cd   :  { %v2530_v46 = vpop.xlane.xlu0 %2529 }
 0x6d7   :  { %v3088_v49 = vpop.eup %3087 }
 0x6d8   :  { %v2521_v61 = vmul.f32 0.6931472, %v3088_v49 }
 0x6da   :  { %v2522_v52 = vadd.f32 %v2521_v61, %v2513_v40 }
 0x6dc   :  { %v2531_v26 = vsub.f32 %v2522_v52, %v2530_v46 }
 0x6de   :  { %2533 = vst.msk [vmem:[%s4190_s20] sm:$0xff] %vm2532_vm13, %v2531_v26 }
 0x6df   :  { %3418 = dma.done.wait [#allocation4], 128  }
 0x6e0   :  { %3419 = vsyncadd [#allocation4], 4294967168 }
 0x6e1   :  { %2551 = vsyncpa [#allocation3], 1 }
 0x6e2   :  { %2552 = vsyncpa [#allocation6], 1 }
 0x6e3   :  { %2553 = vsyncpa [#allocation9], 1 }
 0x6e4   :  { %2554 = vsyncpa [#allocation12], 1 }
 0x6e5   :  { %2555 = vsyncpa [#allocation15], 1 }
 0x6e6   :  { %2556 = vsyncpa [#allocation18], 1 }
 0x6e7   :  { %2557 = vsyncpa [#allocation21], 1 }
 0x6e8   :  { %2558 = vsyncpa [#allocation24], 1 }
 0x6e9   :  { %2559 = vsyncpa [#allocation4], 1 }

</bundles_post_ra>
